<compile_context>
chip_gen: v6e
topology: v6e:2x2x1
jax: 0.10.0
libtpu: 0.0.40
codegen_flags: <defaults>
</compile_context>

<pallas_src>
import numpy as np
import jax
import jax.numpy as jnp
from jax import lax
from jax.experimental import pallas as pl
from jax.experimental.pallas import tpu as pltpu

# ---------------------------------------------------------------------------
# Constants (DeepCAD conventions): ['Line','Arc','Circle','EOS','SOL','Ext']
# ---------------------------------------------------------------------------
EOS_IDX = 3
N_COMMANDS = 6
N_ARGS = 16

CMD_ARGS_MASK = np.array(
    [
        [1, 1, 0, 0, 0, 0, 0, 0, 0, 0, 0, 0, 0, 0, 0, 0],  # Line
        [1, 1, 1, 1, 0, 0, 0, 0, 0, 0, 0, 0, 0, 0, 0, 0],  # Arc
        [1, 1, 0, 0, 1, 0, 0, 0, 0, 0, 0, 0, 0, 0, 0, 0],  # Circle
        [0] * 16,                                           # EOS
        [0] * 16,                                           # SOL
        [0, 0, 0, 0, 0, 1, 1, 1, 1, 1, 1, 1, 1, 1, 1, 1],  # Ext
    ],
    dtype=np.float32,
)


def _round_up(x, m):
    return ((x + m - 1) // m) * m


# ---------------------------------------------------------------------------
# Mask helpers (plain-JAX glue, cheap boolean/index logic)
# ---------------------------------------------------------------------------
def _get_visibility_mask(commands):
    """commands: [N, S] int32 -> [N] bool (sequence has non-padding content)."""
    S = commands.shape[-1]
    return jnp.sum((commands == EOS_IDX).astype(jnp.int32), axis=-1) < (S - 1)


def _get_padding_mask(commands, extended=False):
    """commands: [N, S] int32 -> [N, S] float32 (1 before first EOS)."""
    pm = (jnp.cumsum((commands == EOS_IDX).astype(jnp.int32), axis=-1) == 0).astype(
        jnp.float32
    )
    if extended:
        shifted = jnp.concatenate(
            [jnp.zeros_like(pm[..., :1]), pm[..., :-1]], axis=-1
        )
        pm = jnp.minimum(pm + shifted, 1.0)
    return pm


# ---------------------------------------------------------------------------
# Pallas kernel: per-block masked cross-entropy partial sums.
#
# Natural (rows, classes) layouts; reductions over the lane (last) axis:
#   cmd_logits_ref  (row_tile, C)       native dtype
#   tgt_cmd_ref     (row_tile, 1)       int32
#   pad_mask_ref    (row_tile, 1)       float32
#   args_logits_ref (row_tile, A, D)    native dtype
#   tgt_args_ref    (row_tile, A)       int32  (already shifted by +1)
#   args_mask_ref   (row_tile, A)       float32 (0/1)
#   out_ref         (1, 8, 128)         f32: sublanes 0..3 carry the 4 partials.
#
# The row axis of one tile is processed in `n_chunks` chunks of `chunk_rows`
# rows each so the whole-tile f32 temporaries never live at once.
# ---------------------------------------------------------------------------
def _make_cad_loss_kernel(chunk_rows, n_chunks):
    def kernel(cmd_ref, tgt_cmd_ref, pad_mask_ref,
               args_ref, tgt_args_ref, args_mask_ref, out_ref):

        def body(ci, carry):
            cmd_s, cmd_c, arg_s, arg_c = carry
            r0 = pl.multiple_of(ci * chunk_rows, 8)

            # ---- command cross-entropy (softmax over the lane/class axis) ----
            cl = cmd_ref[pl.ds(r0, chunk_rows), :]                  # (cr, C) native
            zc = cl - jnp.max(cl, axis=-1, keepdims=True)           # native dtype
            ec = jnp.exp(zc.astype(jnp.float32))                    # f32 only at exp
            lse_c = jnp.log(jnp.sum(ec, axis=-1, keepdims=True))    # (cr, 1) f32
            tc = tgt_cmd_ref[pl.ds(r0, chunk_rows), :]              # (cr, 1) i32
            c_iota = lax.broadcasted_iota(jnp.int32, zc.shape, 1)   # (cr, C)
            pick_c = jnp.sum(
                jnp.where(c_iota == tc, zc, jnp.zeros_like(zc)),
                axis=-1, keepdims=True).astype(jnp.float32)         # (cr, 1)
            pm = pad_mask_ref[pl.ds(r0, chunk_rows), :]             # (cr, 1) f32
            ce_c = lse_c - pick_c
            # where(): keeps garbage rows of a partial tail block from poisoning the sum
            cmd_s = cmd_s + jnp.sum(jnp.where(pm > 0.0, ce_c, 0.0))
            cmd_c = cmd_c + jnp.sum(pm)

            # ---- args cross-entropy (softmax over the lane/class axis) ----
            al = args_ref[pl.ds(r0, chunk_rows), :, :]              # (cr, A, D) native
            za = al - jnp.max(al, axis=-1, keepdims=True)           # native dtype
            ea = jnp.exp(za.astype(jnp.float32))                    # f32 only at exp
            lse_a = jnp.log(jnp.sum(ea, axis=-1))                   # (cr, A) f32
            ta = tgt_args_ref[pl.ds(r0, chunk_rows), :]             # (cr, A) i32
            d_iota = lax.broadcasted_iota(jnp.int32, za.shape, 2)   # (cr, A, D)
            pick_a = jnp.sum(
                jnp.where(d_iota == ta[..., None], za, jnp.zeros_like(za)),
                axis=-1).astype(jnp.float32)                        # (cr, A)
            am = args_mask_ref[pl.ds(r0, chunk_rows), :]            # (cr, A) f32
            ce_a = lse_a - pick_a
            arg_s = arg_s + jnp.sum(jnp.where(am > 0.0, ce_a, 0.0))
            arg_c = arg_c + jnp.sum(am)
            return cmd_s, cmd_c, arg_s, arg_c

        zero = jnp.zeros((1, 1), jnp.float32)
        cmd_s, cmd_c, arg_s, arg_c = lax.fori_loop(
            0, n_chunks, body, (zero, zero, zero, zero))

        # ---- pack the 4 partial sums into the per-block output slab ----
        sub = lax.broadcasted_iota(jnp.int32, out_ref.shape, 1)     # (1, 8, 128)
        out_ref[...] = jnp.where(
            sub == 0, cmd_s,
            jnp.where(sub == 1, cmd_c,
                      jnp.where(sub == 2, arg_s,
                                jnp.where(sub == 3, arg_c, 0.0))))

    return kernel


# ---------------------------------------------------------------------------
# Wrapper: mask prep (cheap), VMEM-aware tiling, tiled pallas_call.
# ---------------------------------------------------------------------------
def cad_loss(command_logits, args_logits, tgt_commands, tgt_args, loss_weights,
             *, row_tile=None):
    tgt_commands = tgt_commands.astype(jnp.int32)
    tgt_args = tgt_args.astype(jnp.int32)

    N, S = tgt_commands.shape
    C = command_logits.shape[-1]
    A = tgt_args.shape[-1]
    D = args_logits.shape[-1]
    NS = N * S

    # ---- masks (tiny vs. the logits traffic) ----
    vis = _get_visibility_mask(tgt_commands)                                   # [N]
    pad = _get_padding_mask(tgt_commands, extended=True) * vis[:, None].astype(
        jnp.float32)                                                           # [N,S]
    args_mask = jnp.asarray(CMD_ARGS_MASK, dtype=jnp.float32)[tgt_commands]    # [N,S,A]

    # ---- natural layouts: zero-copy reshapes, NO transpose / pad of the logits ----
    cmd_rows = command_logits.reshape(NS, C)          # (NS, C)
    args_rows = args_logits.reshape(NS, A, D)         # (NS, A, D)

    # ---- VMEM-aware tile sizing (padded input tiles x2 buffers + f32 chunk temps) ----
    it_args = jnp.dtype(args_logits.dtype).itemsize
    it_cmd = jnp.dtype(command_logits.dtype).itemsize
    D_pad = _round_up(D, 128)          # lane padding inside VMEM
    A_pad = _round_up(A, 8)            # sublane padding inside VMEM

    try:
        vmem_cap = int(pltpu.get_tpu_info().vmem_capacity_bytes)
    except Exception:  # pragma: no cover - conservative fallback (covers v7x 64 MiB/TC)
        vmem_cap = 64 * 1024 * 1024
    # ~3/4 of per-core VMEM: ~96 MiB on v5e/v6e (128 MiB phys), ~48 MiB on v7x (64 MiB/TC).
    vmem_limit = (min(vmem_cap, 128 * 1024 * 1024) * 3) // 4

    # f32 temporaries materialized per row inside one softmax chunk (~5 live full tiles).
    temps_per_row = 5 * (A_pad * D_pad * 4) + 5 * (128 * 4)
    chunk_budget = min(6 * 1024 * 1024, vmem_limit // 4)
    chunk_rows = max(8, min(512, (chunk_budget // temps_per_row) // 8 * 8))

    # VMEM-resident (layout-padded) input bytes per row; x2 for double buffering.
    in_row = (A_pad * D_pad * it_args          # args logits tile
              + 128 * it_cmd                   # cmd logits tile (C -> 128 lanes)
              + 4 * 128 * 4)                   # tgt_cmd, pad_mask, tgt_args, args_mask
    if row_tile is None:
        input_budget = max(2 * in_row * 8,
                           vmem_limit - chunk_budget - 4 * 1024 * 1024)
        row_tile = max(8, (input_budget // (2 * in_row)) // 8 * 8)
    row_tile = max(8, _round_up(int(row_tile), 8))
    row_tile = min(row_tile, _round_up(NS, 8))
    # v7x megacore: keep >= 2 blocks whenever there is enough work for both TensorCores.
    if NS > 8 and pl.cdiv(NS, row_tile) < 2:
        row_tile = _round_up(pl.cdiv(NS, 2), 8)
    # Make the in-kernel chunking exactly cover the tile.
    if row_tile >= chunk_rows:
        row_tile = (row_tile // chunk_rows) * chunk_rows
    else:
        chunk_rows = row_tile
    n_chunks = row_tile // chunk_rows
    num_blocks = pl.cdiv(NS, row_tile)
    NS_pad = num_blocks * row_tile

    # ---- pad ONLY the tiny per-row target/mask arrays (never the logits) ----
    def _pad_rows(x2d):
        if NS_pad == NS:
            return x2d
        return jnp.pad(x2d, ((0, NS_pad - NS), (0, 0)))

    tc2 = _pad_rows(tgt_commands.reshape(NS, 1))                 # (NS_pad, 1) i32
    pm2 = _pad_rows(pad.reshape(NS, 1))                          # (NS_pad, 1) f32
    ta2 = _pad_rows((tgt_args + 1).reshape(NS, A))               # (NS_pad, A) i32
    am2 = _pad_rows(args_mask.reshape(NS, A))                    # (NS_pad, A) f32

    bytes_accessed = int(
        NS * C * it_cmd + NS * A * D * it_args
        + NS_pad * (4 + 4) + NS_pad * A * (4 + 4)
        + num_blocks * 8 * 128 * 4
    )
    cost = pl.CostEstimate(
        flops=int(6 * NS * A * D + 6 * NS * C),
        transcendentals=int(NS * A * (D + 1) + NS * (C + 1)),
        bytes_accessed=bytes_accessed,
    )

    partials = pl.pallas_call(
        _make_cad_loss_kernel(chunk_rows, n_chunks),
        out_shape=jax.ShapeDtypeStruct((num_blocks, 8, 128), jnp.float32),
        grid=(num_blocks,),
        in_specs=[
            pl.BlockSpec((row_tile, C), lambda i: (i, 0)),
            pl.BlockSpec((row_tile, 1), lambda i: (i, 0)),
            pl.BlockSpec((row_tile, 1), lambda i: (i, 0)),
            pl.BlockSpec((row_tile, A, D), lambda i: (i, 0, 0)),
            pl.BlockSpec((row_tile, A), lambda i: (i, 0)),
            pl.BlockSpec((row_tile, A), lambda i: (i, 0)),
        ],
        out_specs=pl.BlockSpec((1, 8, 128), lambda i: (i, 0, 0)),
        compiler_params=pltpu.CompilerParams(
            dimension_semantics=("parallel",),     # blocks are independent (v7x: 2 TCs)
            vmem_limit_bytes=int(vmem_limit),
        ),
        cost_estimate=cost,
    )(cmd_rows, tc2, pm2, args_rows, ta2, am2)

    totals = jnp.sum(partials, axis=0)     # (8, 128); sublanes 0..3 hold the 4 sums
    cmd_sum, cmd_cnt = totals[0, 0], totals[1, 0]
    args_sum, args_cnt = totals[2, 0], totals[3, 0]

    # NOTE: if sum(pad)==0 or sum(args_mask)==0 this divides by zero, matching the
    # PyTorch masked-select + mean behavior (NaN).  Documented precondition.
    loss_cmd = loss_weights["loss_cmd_weight"] * cmd_sum / cmd_cnt
    loss_args = loss_weights["loss_args_weight"] * args_sum / args_cnt
    # TODO(synk): the 'l1-loss' branch (pred_type contains 'conv') is not implemented;
    # this script realizes the pred_type == 'quantize' (cross-entropy) configuration.
    return {"loss_cmd": loss_cmd, "loss_args": loss_args}


# ---------------------------------------------------------------------------
# Pure-JAX reference for validation
# ---------------------------------------------------------------------------
def cad_loss_ref(command_logits, args_logits, tgt_commands, tgt_args, loss_weights):
    tgt_commands = tgt_commands.astype(jnp.int32)
    tgt_args = tgt_args.astype(jnp.int32)
    vis = _get_visibility_mask(tgt_commands)
    pad = _get_padding_mask(tgt_commands, extended=True) * vis[:, None].astype(
        jnp.float32
    )
    args_mask = jnp.asarray(CMD_ARGS_MASK)[tgt_commands]

    logp_c = jax.nn.log_softmax(command_logits.astype(jnp.float32), axis=-1)
    ce_c = -jnp.take_along_axis(logp_c, tgt_commands[..., None], axis=-1)[..., 0]
    loss_cmd = jnp.sum(ce_c * pad) / jnp.sum(pad)

    logp_a = jax.nn.log_softmax(args_logits.astype(jnp.float32), axis=-1)
    ce_a = -jnp.take_along_axis(logp_a, (tgt_args + 1)[..., None], axis=-1)[..., 0]
    loss_args = jnp.sum(ce_a * args_mask) / jnp.sum(args_mask)

    return {
        "loss_cmd": loss_weights["loss_cmd_weight"] * loss_cmd,
        "loss_args": loss_weights["loss_args_weight"] * loss_args,
    }


# ---------------------------------------------------------------------------
if __name__ == "__main__":
    loss_weights = {"loss_cmd_weight": 1.0, "loss_args_weight": 2.0}

    N, S, A = 2, 8, N_ARGS
    # Deterministic, DeepCAD-like command sequences (EOS_IDX = 3).
    tgt_commands = jnp.array(
        [
            [4, 0, 1, 2, 3, 3, 3, 3],  # SOL, Line, Arc, Circle, EOS padding...
            [4, 0, 0, 5, 1, 2, 0, 3],  # active until final EOS
        ],
        dtype=jnp.int32,
    )

    key = jax.random.PRNGKey(0)
    # Test both the real DeepCAD arg quantization (args_dim=256 -> D=257, lane-dense
    # natural layout) and a tiny-D configuration.
    for args_dim in (256, 8):
        D = args_dim + 1
        key, k1, k2, k3 = jax.random.split(key, 4)
        tgt_args = jax.random.randint(k1, (N, S, A), -1, args_dim, dtype=jnp.int32)
        command_logits = jax.random.normal(k2, (N, S, N_COMMANDS), dtype=jnp.float32)
        args_logits = jax.random.normal(k3, (N, S, A, D), dtype=jnp.float32)

        out = cad_loss(command_logits, args_logits, tgt_commands, tgt_args,
                       loss_weights)
        out = jax.tree_util.tree_map(jax.block_until_ready, out)

        ref = cad_loss_ref(command_logits, args_logits, tgt_commands, tgt_args,
                           loss_weights)
        assert np.allclose(np.asarray(out["loss_cmd"]), np.asarray(ref["loss_cmd"]),
                           rtol=1e-5, atol=1e-5), (args_dim, out["loss_cmd"],
                                                   ref["loss_cmd"])
        assert np.allclose(np.asarray(out["loss_args"]), np.asarray(ref["loss_args"]),
                           rtol=1e-5, atol=1e-5), (args_dim, out["loss_args"],
                                                   ref["loss_args"])

    print("KERNEL_OK")
</pallas_src>

<mosaic_0001>
module attributes {stable_mosaic.version = 11 : i64} {
  func.func @kernel(%arg0: i32, %arg1: memref<8x6xf32, #tpu.memory_space<vmem>>, %arg2: memref<8x1xi32, #tpu.memory_space<vmem>>, %arg3: memref<8x1xf32, #tpu.memory_space<vmem>>, %arg4: memref<8x16x257xf32, #tpu.memory_space<vmem>>, %arg5: memref<8x16xi32, #tpu.memory_space<vmem>>, %arg6: memref<8x16xf32, #tpu.memory_space<vmem>>, %arg7: memref<1x8x128xf32, #tpu.memory_space<vmem>>) attributes {dimension_semantics = [#tpu.dimension_semantics<parallel>], iteration_bounds = array<i64: 2>, scalar_prefetch = 0 : i64, scratch_operands = 0 : i64, tpu.core_type = #tpu.core_type<tc>, window_params = [{transform_indices = @transform_0, window_bounds = array<i64: 8, 6>}, {transform_indices = @transform_1, window_bounds = array<i64: 8, 1>}, {transform_indices = @transform_2, window_bounds = array<i64: 8, 1>}, {transform_indices = @transform_3, window_bounds = array<i64: 8, 16, 257>}, {transform_indices = @transform_4, window_bounds = array<i64: 8, 16>}, {transform_indices = @transform_5, window_bounds = array<i64: 8, 16>}, {transform_indices = @transform_6, window_bounds = array<i64: 1, 8, 128>}]} {
    %cst = arith.constant 0.000000e+00 : f32
    %0 = vector.broadcast %cst : f32 to vector<1x1xf32>
    %c0_i32 = arith.constant 0 : i32
    %c8_i32 = arith.constant 8 : i32
    %1 = arith.muli %c0_i32, %c8_i32 : i32
    %2 = tpu.assume_multiple %1, 8 : i32
    %3 = arith.index_cast %2 : i32 to index
    %c0 = arith.constant 0 : index
    %4 = vector.load %arg1[%3, %c0] : memref<8x6xf32, #tpu.memory_space<vmem>>, vector<8x6xf32>
    %cst_0 = arith.constant dense<0xFF800000> : vector<8xf32>
    %5 = vector.multi_reduction <maximumf>, %4, %cst_0 [1] : vector<8x6xf32> to vector<8xf32>
    %6 = vector.shape_cast %5 : vector<8xf32> to vector<8x1xf32>
    %7 = vector.broadcast %6 : vector<8x1xf32> to vector<8x6xf32>
    %8 = arith.subf %4, %7 : vector<8x6xf32>
    %9 = math.exp %8 : vector<8x6xf32>
    %cst_1 = arith.constant dense<0.000000e+00> : vector<8xf32>
    %10 = vector.multi_reduction <add>, %9, %cst_1 [1] : vector<8x6xf32> to vector<8xf32>
    %11 = vector.shape_cast %10 : vector<8xf32> to vector<8x1xf32>
    %12 = math.log %11 : vector<8x1xf32>
    %13 = arith.index_cast %2 : i32 to index
    %c0_2 = arith.constant 0 : index
    %14 = vector.load %arg2[%13, %c0_2] : memref<8x1xi32, #tpu.memory_space<vmem>>, vector<8x1xi32>
    %15 = tpu.iota {dimensions = array<i32: 1>} : vector<8x6xi32>
    %16 = vector.broadcast %14 : vector<8x1xi32> to vector<8x6xi32>
    %17 = arith.cmpi eq, %15, %16 : vector<8x6xi32>
    %cst_3 = arith.constant 0.000000e+00 : f32
    %18 = vector.broadcast %cst_3 : f32 to vector<8x6xf32>
    %19 = arith.select %17, %8, %18 : vector<8x6xi1>, vector<8x6xf32>
    %cst_4 = arith.constant dense<0.000000e+00> : vector<8xf32>
    %20 = vector.multi_reduction <add>, %19, %cst_4 [1] : vector<8x6xf32> to vector<8xf32>
    %21 = vector.shape_cast %20 : vector<8xf32> to vector<8x1xf32>
    %22 = arith.index_cast %2 : i32 to index
    %c0_5 = arith.constant 0 : index
    %23 = vector.load %arg3[%22, %c0_5] : memref<8x1xf32, #tpu.memory_space<vmem>>, vector<8x1xf32>
    %24 = arith.subf %12, %21 : vector<8x1xf32>
    %cst_6 = arith.constant 0.000000e+00 : f32
    %25 = vector.broadcast %cst_6 : f32 to vector<8x1xf32>
    %26 = arith.cmpf ogt, %23, %25 : vector<8x1xf32>
    %cst_7 = arith.constant 0.000000e+00 : f32
    %27 = vector.broadcast %cst_7 : f32 to vector<8x1xf32>
    %28 = arith.select %26, %24, %27 : vector<8x1xi1>, vector<8x1xf32>
    %29 = vector.shape_cast %28 : vector<8x1xf32> to vector<1x8x1xf32>
    %cst_8 = arith.constant dense<0.000000e+00> : vector<1xf32>
    %30 = vector.multi_reduction <add>, %29, %cst_8 [1, 2] : vector<1x8x1xf32> to vector<1xf32>
    %31 = vector.shape_cast %30 : vector<1xf32> to vector<1x1x1xf32>
    %32 = vector.extract %31[0, 0, 0] : f32 from vector<1x1x1xf32>
    %33 = vector.broadcast %32 : f32 to vector<1x1xf32>
    %34 = arith.addf %0, %33 : vector<1x1xf32>
    %35 = vector.shape_cast %23 : vector<8x1xf32> to vector<1x8x1xf32>
    %cst_9 = arith.constant dense<0.000000e+00> : vector<1xf32>
    %36 = vector.multi_reduction <add>, %35, %cst_9 [1, 2] : vector<1x8x1xf32> to vector<1xf32>
    %37 = vector.shape_cast %36 : vector<1xf32> to vector<1x1x1xf32>
    %38 = vector.extract %37[0, 0, 0] : f32 from vector<1x1x1xf32>
    %39 = vector.broadcast %38 : f32 to vector<1x1xf32>
    %40 = arith.addf %0, %39 : vector<1x1xf32>
    %41 = arith.index_cast %2 : i32 to index
    %c0_10 = arith.constant 0 : index
    %c0_11 = arith.constant 0 : index
    %42 = vector.load %arg4[%41, %c0_10, %c0_11] : memref<8x16x257xf32, #tpu.memory_space<vmem>>, vector<8x16x257xf32>
    %cst_12 = arith.constant dense<0xFF800000> : vector<8x16xf32>
    %43 = vector.multi_reduction <maximumf>, %42, %cst_12 [2] : vector<8x16x257xf32> to vector<8x16xf32>
    %44 = vector.shape_cast %43 : vector<8x16xf32> to vector<8x16x1xf32>
    %45 = vector.broadcast %44 : vector<8x16x1xf32> to vector<8x16x257xf32>
    %46 = arith.subf %42, %45 : vector<8x16x257xf32>
    %47 = math.exp %46 : vector<8x16x257xf32>
    %cst_13 = arith.constant dense<0.000000e+00> : vector<8x16xf32>
    %48 = vector.multi_reduction <add>, %47, %cst_13 [2] : vector<8x16x257xf32> to vector<8x16xf32>
    %49 = math.log %48 : vector<8x16xf32>
    %50 = arith.index_cast %2 : i32 to index
    %c0_14 = arith.constant 0 : index
    %51 = vector.load %arg5[%50, %c0_14] : memref<8x16xi32, #tpu.memory_space<vmem>>, vector<8x16xi32>
    %52 = tpu.iota {dimensions = array<i32: 2>} : vector<8x16x257xi32>
    %53 = vector.shape_cast %51 : vector<8x16xi32> to vector<8x16x1xi32>
    %54 = vector.broadcast %53 : vector<8x16x1xi32> to vector<8x16x257xi32>
    %55 = arith.cmpi eq, %52, %54 : vector<8x16x257xi32>
    %cst_15 = arith.constant 0.000000e+00 : f32
    %56 = vector.broadcast %cst_15 : f32 to vector<8x16x257xf32>
    %57 = arith.select %55, %46, %56 : vector<8x16x257xi1>, vector<8x16x257xf32>
    %cst_16 = arith.constant dense<0.000000e+00> : vector<8x16xf32>
    %58 = vector.multi_reduction <add>, %57, %cst_16 [2] : vector<8x16x257xf32> to vector<8x16xf32>
    %59 = arith.index_cast %2 : i32 to index
    %c0_17 = arith.constant 0 : index
    %60 = vector.load %arg6[%59, %c0_17] : memref<8x16xf32, #tpu.memory_space<vmem>>, vector<8x16xf32>
    %61 = arith.subf %49, %58 : vector<8x16xf32>
    %cst_18 = arith.constant 0.000000e+00 : f32
    %62 = vector.broadcast %cst_18 : f32 to vector<8x16xf32>
    %63 = arith.cmpf ogt, %60, %62 : vector<8x16xf32>
    %cst_19 = arith.constant 0.000000e+00 : f32
    %64 = vector.broadcast %cst_19 : f32 to vector<8x16xf32>
    %65 = arith.select %63, %61, %64 : vector<8x16xi1>, vector<8x16xf32>
    %66 = vector.shape_cast %65 : vector<8x16xf32> to vector<1x8x16xf32>
    %cst_20 = arith.constant dense<0.000000e+00> : vector<1xf32>
    %67 = vector.multi_reduction <add>, %66, %cst_20 [1, 2] : vector<1x8x16xf32> to vector<1xf32>
    %68 = vector.shape_cast %67 : vector<1xf32> to vector<1x1x1xf32>
    %69 = vector.extract %68[0, 0, 0] : f32 from vector<1x1x1xf32>
    %70 = vector.broadcast %69 : f32 to vector<1x1xf32>
    %71 = arith.addf %0, %70 : vector<1x1xf32>
    %72 = vector.shape_cast %60 : vector<8x16xf32> to vector<1x8x16xf32>
    %cst_21 = arith.constant dense<0.000000e+00> : vector<1xf32>
    %73 = vector.multi_reduction <add>, %72, %cst_21 [1, 2] : vector<1x8x16xf32> to vector<1xf32>
    %74 = vector.shape_cast %73 : vector<1xf32> to vector<1x1x1xf32>
    %75 = vector.extract %74[0, 0, 0] : f32 from vector<1x1x1xf32>
    %76 = vector.broadcast %75 : f32 to vector<1x1xf32>
    %77 = arith.addf %0, %76 : vector<1x1xf32>
    %c1_i32 = arith.constant 1 : i32
    %78 = tpu.iota {dimensions = array<i32: 1>} : vector<1x8x128xi32>
    %c0_i32_22 = arith.constant 0 : i32
    %79 = vector.broadcast %c0_i32_22 : i32 to vector<1x8x128xi32>
    %80 = arith.cmpi eq, %78, %79 : vector<1x8x128xi32>
    %c1_i32_23 = arith.constant 1 : i32
    %81 = vector.broadcast %c1_i32_23 : i32 to vector<1x8x128xi32>
    %82 = arith.cmpi eq, %78, %81 : vector<1x8x128xi32>
    %c2_i32 = arith.constant 2 : i32
    %83 = vector.broadcast %c2_i32 : i32 to vector<1x8x128xi32>
    %84 = arith.cmpi eq, %78, %83 : vector<1x8x128xi32>
    %c3_i32 = arith.constant 3 : i32
    %85 = vector.broadcast %c3_i32 : i32 to vector<1x8x128xi32>
    %86 = arith.cmpi eq, %78, %85 : vector<1x8x128xi32>
    %cst_24 = arith.constant 0.000000e+00 : f32
    %87 = vector.shape_cast %77 : vector<1x1xf32> to vector<1x1x1xf32>
    %88 = vector.broadcast %87 : vector<1x1x1xf32> to vector<1x8x128xf32>
    %89 = vector.broadcast %cst_24 : f32 to vector<1x8x128xf32>
    %90 = arith.select %86, %88, %89 : vector<1x8x128xi1>, vector<1x8x128xf32>
    %91 = vector.shape_cast %71 : vector<1x1xf32> to vector<1x1x1xf32>
    %92 = vector.broadcast %91 : vector<1x1x1xf32> to vector<1x8x128xf32>
    %93 = arith.select %84, %92, %90 : vector<1x8x128xi1>, vector<1x8x128xf32>
    %94 = vector.shape_cast %40 : vector<1x1xf32> to vector<1x1x1xf32>
    %95 = vector.broadcast %94 : vector<1x1x1xf32> to vector<1x8x128xf32>
    %96 = arith.select %82, %95, %93 : vector<1x8x128xi1>, vector<1x8x128xf32>
    %97 = vector.shape_cast %34 : vector<1x1xf32> to vector<1x1x1xf32>
    %98 = vector.broadcast %97 : vector<1x1x1xf32> to vector<1x8x128xf32>
    %99 = arith.select %80, %98, %96 : vector<1x8x128xi1>, vector<1x8x128xf32>
    %c0_25 = arith.constant 0 : index
    %c0_26 = arith.constant 0 : index
    %c0_27 = arith.constant 0 : index
    %100 = vector.load %arg7[%c0_25, %c0_26, %c0_27] : memref<1x8x128xf32, #tpu.memory_space<vmem>>, vector<1x8x128xf32>
    tpu.vector_store %arg7[%c0_25, %c0_26, %c0_27], %99 {strides = array<i32>} : memref<1x8x128xf32, #tpu.memory_space<vmem>>, vector<1x8x128xf32>,
    return
  }
  func.func @transform_0(%arg0: i32) -> (i32, i32) {
    %c0_i32 = arith.constant 0 : i32
    %c0_i32_0 = arith.constant 0 : i32
    return %arg0, %c0_i32 : i32, i32
  }
  func.func @transform_1(%arg0: i32) -> (i32, i32) {
    %c0_i32 = arith.constant 0 : i32
    %c0_i32_0 = arith.constant 0 : i32
    return %arg0, %c0_i32 : i32, i32
  }
  func.func @transform_2(%arg0: i32) -> (i32, i32) {
    %c0_i32 = arith.constant 0 : i32
    %c0_i32_0 = arith.constant 0 : i32
    return %arg0, %c0_i32 : i32, i32
  }
  func.func @transform_3(%arg0: i32) -> (i32, i32, i32) {
    %c0_i32 = arith.constant 0 : i32
    %c0_i32_0 = arith.constant 0 : i32
    %c0_i32_1 = arith.constant 0 : i32
    return %arg0, %c0_i32, %c0_i32_0 : i32, i32, i32
  }
  func.func @transform_4(%arg0: i32) -> (i32, i32) {
    %c0_i32 = arith.constant 0 : i32
    %c0_i32_0 = arith.constant 0 : i32
    return %arg0, %c0_i32 : i32, i32
  }
  func.func @transform_5(%arg0: i32) -> (i32, i32) {
    %c0_i32 = arith.constant 0 : i32
    %c0_i32_0 = arith.constant 0 : i32
    return %arg0, %c0_i32 : i32, i32
  }
  func.func @transform_6(%arg0: i32) -> (i32, i32, i32) {
    %c0_i32 = arith.constant 0 : i32
    %c0_i32_0 = arith.constant 0 : i32
    %c0_i32_1 = arith.constant 0 : i32
    return %arg0, %c0_i32, %c0_i32_0 : i32, i32, i32
  }
}

</mosaic_0001>

<bundles_post_ra>
// kernel: tpu_custom_call.1
= control target key start
LH: loop header
LB: loop body
LE: loop exit
PB: predicated region body
PF: predicated region fallthrough
CT: control target
= control target key end

     0   :  { %11 = vsyncpa [#allocation3], 0  ;;  %s2840_s0 = inlined_call_operand.vmem [shape: f32[16,6], index: 0, kind: input, shape index: {}]   ;;  %s2841_s1 = inlined_call_operand.vmem [shape: s32[16,1], index: 1, kind: input, shape index: {}]   ;;  %s2842_s2 = inlined_call_operand.vmem [shape: f32[16,1], index: 2, kind: input, shape index: {}]   ;;  %s2843_s3 = inlined_call_operand.hbm [shape: f32[16,16,257], index: 3, kind: input, shape index: {}]   ;;  %s2844_s4 = inlined_call_operand.vmem [shape: s32[16,16], index: 4, kind: input, shape index: {}]   ;;  %s2845_s5 = inlined_call_operand.vmem [shape: f32[16,16], index: 5, kind: input, shape index: {}]   ;;  %s2846_s6 = inlined_call_operand.hbm [shape: f32[2,8,128], index: 6, kind: output, shape index: {}]  }
   0x1   :  { %13 = vsyncpa [#allocation3 + $0x1], 0 }
   0x2   :  { %14 = vsyncpa [#allocation4], 0 }
   0x3   :  { %16 = vsyncpa [#allocation4 + $0x1], 0  ;;  %s1713_s21 = smov 0   ;;  %s1715_s22 = smov 0  }
   0x4   :  { %s1717_s23 = smov 0   ;;  %s1719_s24 = smov 0  }
   0x5 LB: > { %s1734_s25 = sadd.s32 4294967295, %s1671_s24   ;;  %s1368_s26 = sadd.s32 4294967294, %s1671_s24   ;;  %s1671_s24 = sphi %s1719_s24, %s2953_s24   ;;  %s1667_s23 = sphi %s1717_s23, %s2952_s23   ;;  %s1663_s22 = sphi %s1715_s22, %s2951_s22   ;;  %s1659_s21 = sphi %s1713_s21, %s2950_s21  }
   0x6   : > { %s1738_s27 = sadd.s32 1, %s1671_s24   ;;  %s107_s28 = sadd.s32 1, %s1667_s23 }
   0x7   : > { %s104_s29 = ssub.s32 %s1671_s24, %s1738_s27  ;;  %p114_p0 = scmp.ne.s32.totalorder %s1667_s23, %s1663_s22 }
   0x8   : > { %p105_p1 = scmp.eq.s32.totalorder %s104_s29, 0  ;;  %p115_p2 = scmp.eq.s32.totalorder %s1671_s24, 0 }
   0x9   : > { %p120_p3 = scmp.ne.s32.totalorder %s1663_s22, %s1659_s21  ;;  %p121_p4 = scmp.eq.s32.totalorder %s1734_s25, 0 }
   0xa   : > { %s1750_s30 = scalar_select %p105_p1, %s1667_s23, %s107_s28  }
   0xb   : > { %p116_p5 = por %p115_p2, %p114_p0  ;;  %p1752_p6 = por %p121_p4, %p120_p3 }
   0xc   : > { %p196_p7 = scmp.eq.s32.totalorder %s1734_s25, 1  ;;  %p202_p8 = scmp.eq.s32.totalorder %s1368_s26, 1 }
   0xd   : > { %s2877_s7 = scalar_select %p1752_p6, 1, 0 }
   0xe   : > { %p1408_p10 = scmp.lt.s32.totalorder %s1671_s24, 2  ;;  %p1759_p11 = por %p196_p7, %p114_p0 }
   0xf   : > { %p1763_p12 = por %p202_p8, %p120_p3  ;;  %s243_s10 = sand.u32 1, %s1667_s23  }
  0x10   : > { %s2878_s8 = scalar_select %p1759_p11, 1, 0 }
  0x11   : > { %s2879_s9 = scalar_select %p1763_p12, 1, 0 }
  0x12   : > { %s1386_s11 = smul.u32 6144, %s1671_s24  ;;  %p1774_p13 = pnand %p1408_p10, %p116_p5 }
  0x13   : > { %s1385_s12 = smul.u32 384, %s243_s10  ;;  %s1780_s19 = scalar_lea.sflag [#allocation3], %s243_s10 }
  0x14   : > { %s1772_s15 = scalar_lea.hbm %s2843_s3, %s1386_s11  ;;  %p1581_p1 = pneg %p1774_p13 }
  0x15   : > { %s247_s17 = scalar_lea.vmem [#allocation2], %s1385_s12  ;;  %s1579_s20 = scalar_lea.hbm %s1772_s15, 6144 }
  0x16   : > { %s255_s18 = sshll.u32 %s247_s17, 4  ;;  %p1580_p0 = scmp.ne.s32.totalorder %s1772_s15, %s1579_s20  ;;  %s1778_s18 = int_to_ptr.vmem [resolvable:$true] %s255_s18 }
  0x17   : > { %s1584_s29 = scalar_lea.hbm %s2843_s3, 12288  ;;  %p1585_p4 = scmp.lt.s32.totalorder %s1772_s15, %s2843_s3 }
  0x18   : > { %p1582_p2 = pnand %p1581_p1, %p1580_p0  ;;  %p1586_p5 = scmp.lt.s32.totalorder %s1584_s29, %s1579_s20 }
  0x1a   : > { %p1583_p3 = pneg %p1582_p2  ;;  %p1587_p7 = por %p1586_p5, %p1585_p4 }
  0x1c   : > { %p1588_p8 = pnand %p1587_p7, %p1583_p3 }
  0x1e   : > { %1591 = shalt.err (!%p1588_p8)
}
  0x1f   : > { %s1592_s10 = scalar_lea.vmem %s1778_s18, 6144  ;;  %s1673_s12 = smov [#allocation2]  }
  0x20   : > { %p1593_p10 = scmp.ne.s32.totalorder %s1778_s18, %s1592_s10  ;;  %s1597_s14 = sshll.u32 %s1673_s12, 4  ;;  %s1598_s14 = int_to_ptr.vmem [resolvable:$false] %s1597_s14 }
  0x21   : > { %s1599_s17 = scalar_lea.vmem %s1598_s14, 12288  ;;  %p1600_p2 = scmp.lt.s32.totalorder %s1778_s18, %s1598_s14 }
  0x22   : > { %p1595_p9 = pnand %p1593_p10, %p1581_p1  ;;  %p1601_p12 = scmp.lt.s32.totalorder %s1599_s17, %s1592_s10 }
  0x24   : > { %p1596_p0 = pneg %p1595_p9  ;;  %p1602_p11 = por %p1601_p12, %p1600_p2 }
  0x26   : > { %p1603_p6 = pnand %p1602_p11, %p1596_p0 }
  0x28   : > { %1606 = shalt.err (!%p1603_p6)
}
  0x29   : > { %s1674_s20 = smov 384   ;;  %s1675_s26 = smov 24  }
  0x2a   : > { %1403 = dma.hbm_to_vmem [thread:$0]  (!%p1774_p13), %s1772_s15, 6144, %s1778_s18, %s1780_s19, %s1674_s20, %s1674_s20, %s1675_s26  }
  0x2b   : > { %p1374_p9 = scmp.ge.s32.totalorder %s1671_s24, 1  ;;  %p277_p1 = scmp.lt.s32.totalorder %s1671_s24, 3 }
  0x2d   : > { %p278_p3 = pnand %p1374_p9, %p277_p1 }
  0x2f   : > { %281 = sbr.rel (%p278_p3) target bundleno = 681 (0x2a9), region = 44 }
  0x34   : > { %s1804_s28 = sand.u32 1, %s1663_s22   ;;  %p2881_p6 = scmp.ne.s32.totalorder %s2877_s7, 0 }
  0x35   : > { %s1387_s29 = smul.u32 384, %s1804_s28  ;;  %s284_s11 = scalar_lea.sflag [#allocation3], %s1804_s28 }
  0x37   : > { %s1808_s13 = scalar_lea.vmem [#allocation2], %s1387_s29 }
  0x38   : > { %1650 = dma.done.wait (%p2881_p6), %s284_s11, 6144  }
  0x39   : > { %1652 = vsyncadd (%p2881_p6), %s284_s11, 4294961152  ;;  %v1676_v0 = vmov 0   ;;  %vm385_vm0 = vcmask 7168   ;;  %v1815_v1 = vld [vmem:[%s1808_s13 + $0x30] sm:$0xff]  ;;  %v1818_v2 = vld [vmem:[%s1808_s13 + $0x38] sm:$0xff]  ;;  %p336_p11 = scmp.lt.s32.totalorder %s1734_s25, 1 }
  0x3a   : > { %1445 = vset.pattern.permute.xlu1 %v1676_v0  ;;  %1446 = vset.pattern.permute.xlu0 %v1676_v0  ;;  %v1821_v3 = vld [vmem:[%s1808_s13 + $0x40] sm:$0xff]  ;;  %v471_v4 = vmax.f32 %v1815_v1, %v1818_v2  ;;  %v1831_v7 = vld [vmem:[%s1808_s13 + $0x8] sm:$0xff]  ;;  %v1834_v8 = vld [vmem:[%s1808_s13 + $0x10] sm:$0xff]  ;;  %vm2876_vm1 = vcmask 48128   ;;  %s1382_s17 = sshll.u32 %s1734_s25, 7  ;;  %p2947_p13 = scmp.ne.s32.totalorder %s2878_s8, 0 }
  0x3b   : > { %v472_v5 = vsel %vm385_vm0, %v1821_v3, -inf  ;;  %v1828_v6 = vld [vmem:[%s1808_s13] sm:$0xff]  ;;  %v462_v10 = vsel %vm385_vm0, %v1834_v8, -inf  ;;  %v1841_v11 = vld [vmem:[%s1808_s13 + $0x48] sm:$0xff]  ;;  %v1844_v12 = vld [vmem:[%s1808_s13 + $0x50] sm:$0xff]  ;;  %s337_s7 = scalar_select %p336_p11, %s1734_s25, 1 }
  0x3c   : > { %v461_v9 = vmax.f32 %v1828_v6, %v1831_v7  ;;  %v1847_v13 = vld [vmem:[%s1808_s13 + $0x58] sm:$0xff]  ;;  %v473_v14 = vmax.f32 %v471_v4, %v472_v5  ;;  %v476_v15 = vmax.f32 %v1841_v11, %v1844_v12  ;;  %v1857_v18 = vld [vmem:[%s1808_s13 + $0x20] sm:$0xff]  ;;  %v1860_v19 = vld [vmem:[%s1808_s13 + $0x28] sm:$0xff]  ;;  %s1677_s16 = smov [#allocation5]  }
  0x3d   : > { %v477_v16 = vsel %vm385_vm0, %v1847_v13, -inf  ;;  %v1854_v17 = vld [vmem:[%s1808_s13 + $0x18] sm:$0xff]  ;;  %v467_v22 = vsel %vm385_vm0, %v1860_v19, -inf  ;;  %v1870_v24 = vld [vmem:[%s1808_s13 + $0x80] sm:$0xff]  ;;  %v1873_v25 = vld [vmem:[%s1808_s13 + $0x88] sm:$0xff]  ;;  %s2024_s15 = sshll.u32 %s337_s7, 3 }
  0x3e   : > { %v463_v20 = vmax.f32 %v461_v9, %v462_v10  ;;  %v466_v21 = vmax.f32 %v1854_v17, %v1857_v18  ;;  %v1867_v23 = vld [vmem:[%s1808_s13 + $0x78] sm:$0xff]  ;;  %474 = vmax.xlane.f32.xlu1 %v473_v14  ;;  %v478_v26 = vmax.f32 %v476_v15, %v477_v16  ;;  %v1878_v28 = vld [vmem:[%s1808_s13 + $0x60] sm:$0xff]  ;;  %v1881_v29 = vld [vmem:[%s1808_s13 + $0x68] sm:$0xff]  ;;  %v487_v32 = vsel %vm385_vm0, %v1873_v25, -inf  ;;  %s339_s19 = scalar_lea.vmem %s2840_s0, %s2024_s15  ;;  %s352_s14 = scalar_lea.vmem %s2844_s4, %s2024_s15 }
  0x3f   : > { %v486_v27 = vmax.f32 %v1867_v23, %v1870_v24  ;;  %v1884_v30 = vld [vmem:[%s1808_s13 + $0x70] sm:$0xff]  ;;  %v481_v33 = vmax.f32 %v1878_v28, %v1881_v29  ;;  %v1891_v34 = vld [vmem:[%s1808_s13 + $0xa8] sm:$0xff]  ;;  %v1899_v37 = vld [vmem:[%s1808_s13 + $0xb8] sm:$0xff]  ;;  %s343_s26 = scalar_lea.vmem %s2841_s1, %s2024_s15  ;;  %s356_s18 = scalar_lea.vmem %s2845_s5, %s2024_s15 }
  0x40   : > { %464 = vmax.xlane.f32.xlu0 %v463_v20  ;;  %v468_v31 = vmax.f32 %v466_v21, %v467_v22  ;;  %v1894_v35 = vld [vmem:[%s1808_s13 + $0xb0] sm:$0xff]  ;;  %v482_v36 = vsel %vm385_vm0, %v1884_v30, -inf  ;;  %v1905_v39 = vld [vmem:[%s1808_s13 + $0x98] sm:$0xff]  ;;  %v1908_v40 = vld [vmem:[%s1808_s13 + $0xa0] sm:$0xff]  ;;  %v497_v44 = vsel %vm385_vm0, %v1899_v37, -inf  ;;  %s1225_s7 = scalar_lea.sflag [#allocation4], %s1804_s28 }
  0x41   : > { %v1902_v38 = vld [vmem:[%s1808_s13 + $0x90] sm:$0xff]  ;;  %v488_v41 = vmax.f32 %v486_v27, %v487_v32  ;;  %v496_v42 = vmax.f32 %v1891_v34, %v1894_v35  ;;  %v483_v43 = vmax.f32 %v481_v33, %v482_v36  ;;  %v1917_v46 = vld [vmem:[%s1808_s13 + $0xd8] sm:$0xff]  ;;  %v1920_v47 = vld [vmem:[%s1808_s13 + $0xe0] sm:$0xff]  ;;  %v492_v48 = vsel %vm385_vm0, %v1908_v40, -inf }
  0x42   : > { %479 = vmax.xlane.f32.xlu1 %v478_v26  ;;  %v491_v45 = vmax.f32 %v1902_v38, %v1905_v39  ;;  %v1925_v49 = vld [vmem:[%s1808_s13 + $0xe8] sm:$0xff]  ;;  %v1928_v50 = vld [vmem:[%s1808_s13 + $0xc0] sm:$0xff]  ;;  %v1934_v52 = vld [vmem:[%s1808_s13 + $0xd0] sm:$0xff]  ;;  %v506_v54 = vmax.f32 %v1917_v46, %v1920_v47 }
  0x43   : > { %v1931_v51 = vld [vmem:[%s1808_s13 + $0xc8] sm:$0xff]  ;;  %v498_v53 = vmax.f32 %v496_v42, %v497_v44  ;;  %v507_v56 = vsel %vm385_vm0, %v1925_v49, -inf  ;;  %v1946_v59 = vld [vmem:[%s1808_s13 + $0x110] sm:$0xff]  ;;  %v502_v60 = vsel %vm385_vm0, %v1934_v52, -inf  ;;  %v1951_v61 = vld [vmem:[%s1808_s13 + $0x118] sm:$0xff] }
  0x44   : > { %469 = vmax.xlane.f32.xlu0 %v468_v31  ;;  %v493_v55 = vmax.f32 %v491_v45, %v492_v48  ;;  %v501_v57 = vmax.f32 %v1928_v50, %v1931_v51  ;;  %v1943_v58 = vld [vmem:[%s1808_s13 + $0x108] sm:$0xff]  ;;  %v1954_v62 = vld [vmem:[%s1808_s13 + $0xf0] sm:$0xff]  ;;  %v1957_v63 = vld [vmem:[%s1808_s13 + $0xf8] sm:$0xff]  ;;  %v508_v4 = vmax.f32 %v506_v54, %v507_v56  ;;  %v517_v10 = vsel %vm385_vm0, %v1951_v61, -inf }
  0x45   : > { %v1960_v0 = vld [vmem:[%s1808_s13 + $0x100] sm:$0xff]  ;;  %v516_v5 = vmax.f32 %v1943_v58, %v1946_v59  ;;  %v511_v14 = vmax.f32 %v1954_v62, %v1957_v63  ;;  %v1969_v15 = vld [vmem:[%s1808_s13 + $0x138] sm:$0xff]  ;;  %v1978_v21 = vld [vmem:[%s1808_s13 + $0x148] sm:$0xff] }
  0x46   : > { %489 = vmax.xlane.f32.xlu1 %v488_v41  ;;  %v503_v9 = vmax.f32 %v501_v57, %v502_v60  ;;  %v1972_v16 = vld [vmem:[%s1808_s13 + $0x140] sm:$0xff]  ;;  %v512_v20 = vsel %vm385_vm0, %v1960_v0, -inf  ;;  %v1984_v26 = vld [vmem:[%s1808_s13 + $0x128] sm:$0xff]  ;;  %v1987_v27 = vld [vmem:[%s1808_s13 + $0x130] sm:$0xff]  ;;  %v527_v36 = vsel %vm385_vm0, %v1978_v21, -inf }
  0x47   : > { %v1981_v22 = vld [vmem:[%s1808_s13 + $0x120] sm:$0xff]  ;;  %v518_v31 = vmax.f32 %v516_v5, %v517_v10  ;;  %v526_v32 = vmax.f32 %v1969_v15, %v1972_v16  ;;  %v513_v33 = vmax.f32 %v511_v14, %v512_v20  ;;  %v1996_v42 = vld [vmem:[%s1808_s13 + $0x168] sm:$0xff]  ;;  %v522_v44 = vsel %vm385_vm0, %v1987_v27, -inf  ;;  %v2007_v45 = vld [vmem:[%s1808_s13 + $0x178] sm:$0xff] }
  0x48   : > { %484 = vmax.xlane.f32.xlu0 %v483_v43  ;;  %v521_v41 = vmax.f32 %v1981_v22, %v1984_v26  ;;  %v1999_v43 = vld [vmem:[%s1808_s13 + $0x170] sm:$0xff]  ;;  %v2016_v54 = vld [vmem:[%s1808_s13 + $0x160] sm:$0xff]  ;;  %v537_v60 = vsel %vm385_vm0, %v2007_v45, -inf  ;;  %v371_v20 = vlaneseq }
  0x49   : > { %v2010_v48 = vld [vmem:[%s1808_s13 + $0x150] sm:$0xff]  ;;  %2884 = vst [vmem:[#allocation10_spill] sm:$0xff] %v2016_v54  ;;  %v536_v56 = vmax.f32 %v1996_v42, %v1999_v43  ;;  %v532_v5 = vsel %vm385_vm0, %v2016_v54, -inf  ;;  %v2032_v14 = vld [vmem:[%s339_s19] sm:$0xff] }
  0x4a   : > { %499 = vmax.xlane.f32.xlu1 %v498_v53  ;;  %2882 = vst [vmem:[#allocation8_spill] sm:$0xff] %v2010_v48  ;;  %v2013_v53 = vld [vmem:[%s1808_s13 + $0x158] sm:$0xff]  ;;  %v523_v57 = vmax.f32 %v521_v41, %v522_v44  ;;  %s347_s13 = scalar_lea.vmem %s2842_s2, %s2024_s15  ;;  %s1375_s15 = sshll.u32 %s1804_s28, 3 }
  0x4b   : > { %2883 = vst [vmem:[#allocation9_spill] sm:$0xff] %v2013_v53  ;;  %s335_s20 = scalar_lea.vmem [#allocation5], %s1375_s15 }
  0x4c   : > { %494 = vmax.xlane.f32.xlu0 %v493_v55  ;;  %v528_v55 = vmax.f32 %v526_v32, %v527_v36  ;;  %v2036_v32 = vshrl.u32 %v371_v20, 7  ;;  %v797_v36 = vld [vmem:[%s352_s14] sm:$0xff] }
  0x4e   : > { %509 = vmax.xlane.f32.xlu1 %v508_v4  ;;  %v531_v4 = vmax.f32 %v2010_v48, %v2013_v53  ;;  %2885 = vst [vmem:[#allocation11_spill] sm:$0xff] %v2036_v32  ;;  %v813_v44 = vsub.s32 1, %v2036_v32 }
  0x50   : > { %504 = vmax.xlane.f32.xlu0 %v503_v9  ;;  %v538_v9 = vmax.f32 %v536_v56, %v537_v60  ;;  %v533_v10 = vmax.f32 %v531_v4, %v532_v5  ;;  %v824_v56 = vsub.s32 2, %v2036_v32  ;;  %v835_v60 = vsub.s32 3, %v2036_v32 }
  0x51   : > { %v846_v5 = vsub.s32 4, %v2036_v32 }
  0x52   : > { %519 = vmax.xlane.f32.xlu1 %v518_v31  ;;  %v359_v31 = vsel %vm2876_vm1, %v2032_v14, -inf  ;;  %v836_v4 = vrot.slane %v797_v36, %v835_v60 }
  0x54   : > { %514 = vmax.xlane.f32.xlu0 %v513_v33  ;;  %v802_v33 = vsub.s32 0, %v2036_v32 }
  0x56   : > { %529 = vmax.xlane.f32.xlu1 %v528_v55  ;;  %v803_v41 = vrot.slane %v797_v36, %v802_v33  ;;  %v814_v55 = vrot.slane %v797_v36, %v813_v44  ;;  %v868_v33 = vsub.s32 6, %v2036_v32 }
  0x58   : > { %524 = vmax.xlane.f32.xlu0 %v523_v57  ;;  %v825_v57 = vrot.slane %v797_v36, %v824_v56  ;;  %v869_v44 = vrot.slane %v797_v36, %v868_v33  ;;  %v370_v56 = vld [vmem:[%s343_s26] sm:$0xff]  ;;  %s1238_s26 = sshll.u32 %s335_s20, 4  ;;  %s1239_s26 = int_to_ptr.vmem [resolvable:$true] %s1238_s26 }
  0x59   : > { %s1607_s25 = scalar_lea.vmem %s1239_s26, 128 }
  0x5a   : > { %539 = vmax.xlane.f32.xlu1 %v538_v9  ;;  %v847_v9 = vrot.slane %v797_v36, %v846_v5  ;;  %p1608_p12 = scmp.ne.s32.totalorder %s1239_s26, %s1607_s25 }
  0x5c   : > { %534 = vmax.xlane.f32.xlu0 %v533_v10  ;;  %v857_v10 = vsub.s32 5, %v2036_v32  ;;  %p1609_p4 = pnand %p1608_p12, %p2947_p13 }
  0x5e   : > { %p1610_p5 = pneg %p1609_p4 }
  0x60   : > { %360 = vmax.xlane.f32.xlu0 %v359_v31  ;;  %v858_v31 = vrot.slane %v797_v36, %v857_v10 }
  0x6b   : > { %805 = vbcast.lane.b32.xlu1 %v803_v41, 256 }
  0x6f   : > { %816 = vbcast.lane.b32.xlu1 %v814_v55, 256 }
  0x73   : > { %820 = vbcast.lane.b32.xlu1 %v814_v55, 264 }
  0x76   : > { %809 = vbcast.lane.b32.xlu0 %v803_v41, 264  ;;  %v879_v41 = vsub.s32 7, %v2036_v32 }
  0x77   : > { %827 = vbcast.lane.b32.xlu1 %v825_v57, 256 }
  0x78   : > { %v880_v55 = vrot.slane %v797_v36, %v879_v41 }
  0x7a   : > { %831 = vbcast.lane.b32.xlu0 %v825_v57, 264 }
  0x7b   : > { %838 = vbcast.lane.b32.xlu1 %v836_v4, 256 }
  0x7e   : > { %842 = vbcast.lane.b32.xlu0 %v836_v4, 264 }
  0x7f   : > { %849 = vbcast.lane.b32.xlu1 %v847_v9, 256 }
  0x82   : > { %853 = vbcast.lane.b32.xlu0 %v847_v9, 264 }
  0x83   : > { %860 = vbcast.lane.b32.xlu1 %v858_v31, 256 }
  0x86   : > { %864 = vbcast.lane.b32.xlu0 %v858_v31, 264 }
  0x87   : > { %871 = vbcast.lane.b32.xlu1 %v869_v44, 256 }
  0x8a   : > { %875 = vbcast.lane.b32.xlu0 %v869_v44, 264 }
  0x8b   : > { %882 = vbcast.lane.b32.xlu1 %v880_v55, 256 }
  0x8e   : > { %886 = vbcast.lane.b32.xlu0 %v880_v55, 264 }
  0x8f   : > { %374 = vperm.xlu1 %1445, %v370_v56   ;;  %v2074_v56 = vand.u32 127, %v371_v20 }
  0xc7   : > { %v475_v57 = vpop.xlane.xlu1 %474 }
  0xc8   : > { %v2055_v4 = vsub.f32 %v1815_v1, %v475_v57  ;;  %v2058_v9 = vsub.f32 %v1818_v2, %v475_v57  ;;  %v2061_v36 = vsub.f32 %v1821_v3, %v475_v57 }
  0xc9   : > { %v465_v60 = vpop.xlane.xlu0 %464 }
  0xca   : > { %v2064_v31 = vsub.f32 %v1828_v6, %v465_v60  ;;  %v2067_v33 = vsub.f32 %v1831_v7, %v465_v60  ;;  %v601_v44 = vmul.f32 1.442695, %v2055_v4  ;;  %v603_v1 = vmul.f32 1.442695, %v2058_v9 }
  0xcb   : > { %v480_v5 = vpop.xlane.xlu1 %479  ;;  %v2072_v55 = vsub.f32 %v1834_v8, %v465_v60  ;;  %v605_v3 = vmul.f32 1.442695, %v2061_v36 }
  0xcc   : > { %v2078_v57 = vsub.f32 %v1841_v11, %v480_v5  ;;  %v589_v6 = vmul.f32 1.442695, %v2064_v31  ;;  %v591_v7 = vmul.f32 1.442695, %v2067_v33  ;;  %v2083_v32 = vsub.f32 %v1844_v12, %v480_v5 }
  0xcd   : > { %v470_v10 = vpop.xlane.xlu0 %469  ;;  %v2086_v54 = vsub.f32 %v1847_v13, %v480_v5  ;;  %1447 = vpow2.f32 %v601_v44  ;;  %v593_v53 = vmul.f32 1.442695, %v2072_v55  ;;  %v2105_v5 = vadd.s32 128, %v2074_v56 }
  0xce   : > { %2886 = vst [vmem:[#allocation12_spill] sm:$0xff] %v2078_v57  ;;  %2887 = vst [vmem:[#allocation13_spill] sm:$0xff] %v2083_v32  ;;  %v2089_v8 = vsub.f32 %v1854_v17, %v470_v10  ;;  %v2092_v20 = vsub.f32 %v1857_v18, %v470_v10  ;;  %v2095_v11 = vsub.f32 %v1860_v19, %v470_v10  ;;  %1449 = vpow2.f32 %v603_v1 }
  0xcf   : > { %v490_v41 = vpop.xlane.xlu1 %489  ;;  %2888 = vst [vmem:[#allocation14_spill] sm:$0xff] %v2086_v54  ;;  %1451 = vpow2.f32 %v605_v3  ;;  %v607_v12 = vmul.f32 1.442695, %v2078_v57  ;;  %v609_v17 = vmul.f32 1.442695, %v2083_v32 }
  0xd0   : > { %v2100_v13 = vsub.f32 %v1867_v23, %v490_v41  ;;  %1453 = vpow2.f32 %v589_v6  ;;  %v611_v18 = vmul.f32 1.442695, %v2086_v54  ;;  %v595_v19 = vmul.f32 1.442695, %v2089_v8 }
  0xd1   : > { %v485_v2 = vpop.xlane.xlu0 %484  ;;  %1455 = vpow2.f32 %v591_v7  ;;  %v597_v10 = vmul.f32 1.442695, %v2092_v20  ;;  %v599_v44 = vmul.f32 1.442695, %v2095_v11  ;;  %v2111_v23 = vsub.f32 %v1870_v24, %v490_v41 }
  0xd2   : > { %1457 = vpow2.f32 %v593_v53  ;;  %v2114_v3 = vsub.f32 %v1873_v25, %v490_v41  ;;  %v2117_v6 = vsub.f32 %v1878_v28, %v485_v2  ;;  %v619_v7 = vmul.f32 1.442695, %v2100_v13 }
  0xd3   : > { %v500_v60 = vpop.xlane.xlu1 %499  ;;  %2889 = vst [vmem:[#allocation15_spill] sm:$0xff] %v2111_v23  ;;  %1459 = vpow2.f32 %v607_v12  ;;  %v2121_v32 = vsub.f32 %v1881_v29, %v485_v2  ;;  %v2124_v57 = vsub.f32 %v1884_v30, %v485_v2 }
  0xd4   : > { %2890 = vst [vmem:[#allocation16_spill] sm:$0xff] %v2114_v3  ;;  %1461 = vpow2.f32 %v609_v17  ;;  %v2127_v24 = vsub.f32 %v1891_v34, %v500_v60  ;;  %v2130_v25 = vsub.f32 %v1894_v35, %v500_v60  ;;  %v2133_v28 = vsub.f32 %v1899_v37, %v500_v60 }
  0xd5   : > { %v495_v48 = vpop.xlane.xlu0 %494  ;;  %1463 = vpow2.f32 %v611_v18  ;;  %v621_v34 = vmul.f32 1.442695, %v2111_v23  ;;  %v623_v35 = vmul.f32 1.442695, %v2114_v3  ;;  %v2147_v37 = vadd.s32 256, %v2074_v56 }
  0xd6   : > { %2891 = vst [vmem:[#allocation17_spill] sm:$0xff] %v2127_v24  ;;  %2892 = vst [vmem:[#allocation18_spill] sm:$0xff] %v2130_v25  ;;  %v2136_v53 = vsub.f32 %v1902_v38, %v495_v48  ;;  %v2139_v29 = vsub.f32 %v1905_v39, %v495_v48  ;;  %v2142_v30 = vsub.f32 %v1908_v40, %v495_v48  ;;  %1465 = vpow2.f32 %v595_v19 }
  0xd7   : > { %v510_v1 = vpop.xlane.xlu1 %509  ;;  %2893 = vst [vmem:[#allocation19_spill] sm:$0xff] %v2133_v28  ;;  %1467 = vpow2.f32 %v597_v10  ;;  %v613_v38 = vmul.f32 1.442695, %v2117_v6  ;;  %v615_v60 = vmul.f32 1.442695, %v2121_v32 }
  0xd8   : > { %v617_v39 = vmul.f32 1.442695, %v2124_v57  ;;  %1469 = vpow2.f32 %v599_v44  ;;  %v631_v40 = vmul.f32 1.442695, %v2127_v24  ;;  %v633_v48 = vmul.f32 1.442695, %v2130_v25 }
  0xd9   : > { %v505_v54 = vpop.xlane.xlu0 %504  ;;  %v635_v12 = vmul.f32 1.442695, %v2133_v28  ;;  %1471 = vpow2.f32 %v619_v7  ;;  %v625_v17 = vmul.f32 1.442695, %v2136_v53  ;;  %v627_v18 = vmul.f32 1.442695, %v2139_v29 }
  0xda   : > { %v629_v19 = vmul.f32 1.442695, %v2142_v30  ;;  %v2158_v3 = vpop.eup %1447  ;;  %1473 = vpow2.f32 %v621_v34  ;;  %v2161_v23 = vsub.f32 %v1917_v46, %v510_v1  ;;  %v2164_v44 = vsub.f32 %v1920_v47, %v510_v1 }
  0xdb   : > { %v520_v41 = vpop.xlane.xlu1 %519  ;;  %2894 = vst [vmem:[#allocation20_spill] sm:$0xff] %v2158_v3  ;;  %v2167_v25 = vsub.f32 %v1925_v49, %v510_v1  ;;  %v2171_v28 = vpop.eup %1449  ;;  %1475 = vpow2.f32 %v623_v35  ;;  %v2174_v24 = vsub.f32 %v1928_v50, %v505_v54  ;;  %v2177_v3 = vsub.f32 %v1931_v51, %v505_v54 }
  0xdc   : > { %2895 = vst [vmem:[#allocation21_spill] sm:$0xff] %v2161_v23  ;;  %2896 = vst [vmem:[#allocation22_spill] sm:$0xff] %v2164_v44  ;;  %v2180_v46 = vsub.f32 %v1934_v52, %v505_v54  ;;  %v2182_v34 = vpop.eup %1451  ;;  %1477 = vpow2.f32 %v613_v38  ;;  %v2185_v47 = vsub.f32 %v1943_v58, %v520_v41  ;;  %v2188_v49 = vsub.f32 %v1946_v59, %v520_v41 }
  0xdd   : > { %v515_v2 = vpop.xlane.xlu0 %514  ;;  %2897 = vst [vmem:[#allocation23_spill] sm:$0xff] %v2167_v25  ;;  %2898 = vst [vmem:[#allocation24_spill] sm:$0xff] %v2174_v24  ;;  %v2191_v1 = vsub.f32 %v1951_v61, %v520_v41  ;;  %v2193_v50 = vpop.eup %1453  ;;  %1479 = vpow2.f32 %v615_v60  ;;  %v643_v59 = vmul.f32 1.442695, %v2161_v23  ;;  %v645_v61 = vmul.f32 1.442695, %v2164_v44 }
  0xde   : > { %2899 = vst [vmem:[#allocation25_spill] sm:$0xff] %v2177_v3  ;;  %2900 = vst [vmem:[#allocation26_spill] sm:$0xff] %v2180_v46  ;;  %v2196_v51 = vsub.f32 %v1954_v62, %v515_v2  ;;  %v2199_v52 = vsub.f32 %v1957_v63, %v515_v2  ;;  %v2202_v54 = vsub.f32 %v1960_v0, %v515_v2  ;;  %v2206_v35 = vpop.eup %1455  ;;  %1481 = vpow2.f32 %v617_v39 }
  0xdf   : > { %v530_v10 = vpop.xlane.xlu1 %529  ;;  %2901 = vst [vmem:[#allocation27_spill] sm:$0xff] %v2185_v47  ;;  %2902 = vst [vmem:[#allocation28_spill] sm:$0xff] %v2188_v49  ;;  %v647_v41 = vmul.f32 1.442695, %v2167_v25  ;;  %v2213_v62 = vpop.eup %1457  ;;  %1483 = vpow2.f32 %v631_v40  ;;  %v637_v63 = vmul.f32 1.442695, %v2174_v24 }
  0xe0   : > { %2903 = vst [vmem:[#allocation29_spill] sm:$0xff] %v2191_v1  ;;  %2904 = vst [vmem:[#allocation30_spill] sm:$0xff] %v2196_v51  ;;  %v2217_v0 = vmul.f32 1.442695, %v2177_v3  ;;  %v2220_v2 = vmul.f32 1.442695, %v2180_v46  ;;  %v2222_v60 = vpop.eup %1459  ;;  %1485 = vpow2.f32 %v633_v48 }
  0xe1   : > { %v2169_v7 = vpop.xlane.xlu0 %524  ;;  %2905 = vst [vmem:[#allocation31_spill] sm:$0xff] %v2199_v52  ;;  %2906 = vst [vmem:[#allocation32_spill] sm:$0xff] %v2202_v54  ;;  %v2225_v39 = vmul.f32 1.442695, %v2185_v47  ;;  %v2228_v25 = vmul.f32 1.442695, %v2188_v49  ;;  %v2233_v40 = vpop.eup %1461  ;;  %1487 = vpow2.f32 %v635_v12  ;;  %v2247_v49 = vsub.f32 %v1969_v15, %v530_v10 }
  0xe2   : > { %v2231_v44 = vmul.f32 1.442695, %v2191_v1  ;;  %2907 = vst [vmem:[#allocation33_spill] sm:$0xff] %v2233_v40  ;;  %v2236_v23 = vmul.f32 1.442695, %v2196_v51  ;;  %v2244_v3 = vpop.eup %1463  ;;  %1489 = vpow2.f32 %v625_v17  ;;  %v2262_v15 = vsub.f32 %v1978_v21, %v530_v10 }
  0xe3   : > { %v2204_v58 = vpop.xlane.xlu1 %539  ;;  %v2239_v46 = vmul.f32 1.442695, %v2199_v52  ;;  %v2242_v48 = vmul.f32 1.442695, %v2202_v54  ;;  %2908 = vst [vmem:[#allocation34_spill] sm:$0xff] %v2244_v3  ;;  %v2252_v51 = vpop.eup %1465  ;;  %v2255_v52 = vsub.f32 %v1972_v16, %v530_v10  ;;  %1491 = vpow2.f32 %v627_v18 }
  0xe4   : > { %v2259_v24 = vpop.eup %1467  ;;  %2909 = vst [vmem:[#allocation35_spill] sm:$0xff] %v2262_v15  ;;  %1493 = vpow2.f32 %v629_v19  ;;  %v2269_v16 = vsub.f32 %v1981_v22, %v2169_v7  ;;  %v2284_v22 = vmul.f32 1.442695, %v2247_v49 }
  0xe5   : > { %v2211_v38 = vpop.xlane.xlu0 %534  ;;  %v2265_v40 = vpop.eup %1469  ;;  %1495 = vpow2.f32 %v643_v59 }
  0xe6   : > { %2910 = vst [vmem:[#allocation36_spill] sm:$0xff] %v2269_v16  ;;  %v2276_v18 = vpop.eup %1471  ;;  %1497 = vpow2.f32 %v645_v61 }
  0xe7   : > { %v806_v47 = vpop.permute.xlu1 %805  ;;  %1499 = vpow2.f32 %v647_v41  ;;  %v2305_v41 = vmul.f32 1.442695, %v2255_v52 }
  0xe8   : > { %vm888_vm2 = vcmp.eq.s32.totalorder %v2074_v56, %v806_v47  ;;  %vm889_vm3 = vcmp.eq.s32.totalorder %v2105_v5, %v806_v47  ;;  %vm890_vm4 = vcmp.eq.s32.totalorder %v2147_v37, %v806_v47  ;;  %1501 = vpow2.f32 %v637_v63 }
  0xe9   : > { %v361_v12 = vpop.xlane.xlu0 %360  ;;  %v936_v54 = vsel %vm888_vm2, %v2064_v31, 0.0  ;;  %v937_v1 = vsel %vm889_vm3, %v2067_v33, 0.0  ;;  %v938_v3 = vsel %vm890_vm4, %v2072_v55, 0.0  ;;  %v2273_v31 = vsub.f32 %v1984_v26, %v2169_v7  ;;  %v2281_v55 = vpop.eup %1473 }
  0xea   : > { %v984_v47 = vadd.f32 %v937_v1, %v936_v54  ;;  %v985_v17 = vsel %vm385_vm0, %v938_v3, 0.0  ;;  %v2288_v26 = vsub.f32 %v1987_v27, %v2169_v7  ;;  %v2291_v3 = vpop.eup %1475  ;;  %1503 = vpow2.f32 %v2217_v0 }
  0xeb   : > { %v817_v33 = vpop.permute.xlu1 %816  ;;  %v2295_v54 = vpop.eup %1477  ;;  %v2323_v63 = vsub.f32 %v1996_v42, %v2204_v58  ;;  %1505 = vpow2.f32 %v2220_v2 }
  0xec   : > { %vm894_vm5 = vcmp.eq.s32.totalorder %v2074_v56, %v817_v33  ;;  %vm895_vm6 = vcmp.eq.s32.totalorder %v2105_v5, %v817_v33  ;;  %vm896_vm7 = vcmp.eq.s32.totalorder %v2147_v37, %v817_v33  ;;  %v986_v19 = vadd.f32 %v985_v17, %v984_v47  ;;  %v2302_v61 = vpop.eup %1479 }
  0xed   : > { %v810_v21 = vpop.permute.xlu0 %809  ;;  %v942_v10 = vsel %vm894_vm5, %v2055_v4, 0.0  ;;  %v943_v1 = vsel %vm895_vm6, %v2058_v9, 0.0  ;;  %v944_v27 = vsel %vm896_vm7, %v2061_v36, 0.0  ;;  %v2308_v4 = vmul.f32 1.442695, %v2262_v15  ;;  %v2315_v17 = vpop.eup %1481 }
  0xee   : > { %vm891_vm8 = vcmp.eq.s32.totalorder %v2074_v56, %v810_v21  ;;  %vm892_vm9 = vcmp.eq.s32.totalorder %v2105_v5, %v810_v21  ;;  %vm893_vm10 = vcmp.eq.s32.totalorder %v2147_v37, %v810_v21  ;;  %v994_v7 = vadd.f32 %v943_v1, %v942_v10  ;;  %987 = vadd.xlane.f32.xlu1 %v986_v19  ;;  %v2328_v19 = vpop.eup %1483 }
  0xef   : > { %v821_v59 = vpop.permute.xlu1 %820  ;;  %v939_v47 = vsel %vm891_vm8, %v2089_v8, 0.0  ;;  %v2319_v36 = vmul.f32 1.442695, %v2269_v16  ;;  %v2326_v33 = vsub.f32 %v2032_v14, %v361_v12  ;;  %v995_v8 = vsel %vm385_vm0, %v944_v27, 0.0  ;;  %v2338_v1 = vpop.eup %1485 }
  0xf0   : > { %vm897_vm11 = vcmp.eq.s32.totalorder %v2074_v56, %v821_v59  ;;  %v940_v0 = vsel %vm892_vm9, %v2092_v20, 0.0  ;;  %v941_v10 = vsel %vm893_vm10, %v2095_v11, 0.0  ;;  %vm898_vm12 = vcmp.eq.s32.totalorder %v2105_v5, %v821_v59  ;;  %v2342_v15 = vpop.eup %1487 }
  0xf1   : > { %v2310_v9 = vpop.permute.xlu0 %831  ;;  %v996_v42 = vadd.f32 %v995_v8, %v994_v7  ;;  %v989_v14 = vadd.f32 %v940_v0, %v939_v47  ;;  %v990_v12 = vsel %vm385_vm0, %v941_v10, 0.0  ;;  %v2347_v20 = vsub.f32 %v1999_v43, %v2204_v58  ;;  %v2359_v2 = vpop.eup %1489  ;;  %v2912_v47 = vld [vmem:[#allocation13_spill] sm:$0xff]  ;;  %v2913_v0 = vld [vmem:[#allocation14_spill] sm:$0xff] }
  0xf2   : > { %v2351_v11 = vsub.f32 %v2007_v45, %v2204_v58  ;;  %vm899_vm13 = vcmp.eq.s32.totalorder %v2147_v37, %v821_v59  ;;  %1507 = vpow2.f32 %v2225_v39  ;;  %v2356_v21 = vmul.f32 1.442695, %v2323_v63  ;;  %v2911_v45 = vld [vmem:[#allocation12_spill] sm:$0xff]  ;;  %v2369_v8 = vpop.eup %1491 }
  0xf3   : > { %v828_v16 = vpop.permute.xlu1 %827  ;;  %997 = vadd.xlane.f32.xlu1 %v996_v42  ;;  %v991_v27 = vadd.f32 %v990_v12, %v989_v14  ;;  %1509 = vpow2.f32 %v2228_v25  ;;  %v363_v43 = vmul.f32 1.442695, %v2326_v33  ;;  %v945_v58 = vsel %vm897_vm11, %v2911_v45, 0.0  ;;  %v2376_v14 = vpop.eup %1493 }
  0xf4   : > { %vm900_vm14 = vcmp.eq.s32.totalorder %v2074_v56, %v828_v16  ;;  %v946_v39 = vsel %vm898_vm12, %v2912_v47, 0.0  ;;  %1511 = vpow2.f32 %v2231_v44  ;;  %vm901_vm15 = vcmp.eq.s32.totalorder %v2105_v5, %v828_v16 }
  0xf5   : > { %v843_v7 = vpop.permute.xlu0 %842  ;;  %992 = vadd.xlane.f32.xlu0 %v991_v27  ;;  %v947_v25 = vsel %vm899_vm13, %v2913_v0, 0.0  ;;  %v999_v10 = vadd.f32 %v946_v39, %v945_v58  ;;  %vm903_vm2 = vcmp.eq.s32.totalorder %v2074_v56, %v2310_v9  ;;  %vm902_vm3 = vcmp.eq.s32.totalorder %v2147_v37, %v828_v16  ;;  %v2385_v27 = vpop.eup %1495 }
  0xf6   : > { %v1000_v12 = vsel %vm385_vm0, %v947_v25, 0.0  ;;  %v948_v44 = vsel %vm900_vm14, %v2117_v6, 0.0  ;;  %1513 = vpow2.f32 %v2236_v23  ;;  %vm904_vm4 = vcmp.eq.s32.totalorder %v2105_v5, %v2310_v9  ;;  %v2392_v45 = vpop.eup %1497  ;;  %v2914_v25 = vld [vmem:[#allocation15_spill] sm:$0xff] }
  0xf7   : > { %v839_v42 = vpop.permute.xlu1 %838  ;;  %vm905_vm5 = vcmp.eq.s32.totalorder %v2147_v37, %v2310_v9  ;;  %v1001_v59 = vadd.f32 %v1000_v12, %v999_v10  ;;  %vm909_vm6 = vcmp.eq.s32.totalorder %v2074_v56, %v843_v7  ;;  %vm910_vm7 = vcmp.eq.s32.totalorder %v2105_v5, %v843_v7  ;;  %v2400_v23 = vpop.eup %1499  ;;  %v2915_v12 = vld [vmem:[#allocation16_spill] sm:$0xff] }
  0xf8   : > { %vm906_vm8 = vcmp.eq.s32.totalorder %v2074_v56, %v839_v42  ;;  %v949_v6 = vsel %vm901_vm15, %v2121_v32, 0.0  ;;  %vm907_vm9 = vcmp.eq.s32.totalorder %v2105_v5, %v839_v42  ;;  %v950_v58 = vsel %vm902_vm3, %v2124_v57, 0.0  ;;  %v2421_v16 = vpop.eup %1501 }
  0xf9   : > { %1002 = vadd.xlane.f32.xlu0 %v1001_v59  ;;  %v1004_v47 = vadd.f32 %v949_v6, %v948_v44  ;;  %v951_v39 = vsel %vm903_vm2, %v2100_v13, 0.0  ;;  %1515 = vpow2.f32 %v363_v43  ;;  %v2410_v0 = vpop.permute.xlu0 %853  ;;  %v1005_v32 = vsel %vm385_vm0, %v950_v58, 0.0  ;;  %v2425_v59 = vpop.eup %1503 }
  0xfa   : > { %v952_v10 = vsel %vm904_vm4, %v2914_v25, 0.0  ;;  %v953_v57 = vsel %vm905_vm5, %v2915_v12, 0.0  ;;  %vm908_vm10 = vcmp.eq.s32.totalorder %v2147_v37, %v839_v42  ;;  %1517 = vpow2.f32 %v2239_v46  ;;  %v2918_v42 = vld [vmem:[#allocation19_spill] sm:$0xff] }
  0xfb   : > { %v1006_v13 = vadd.f32 %v1005_v32, %v1004_v47  ;;  %v1009_v43 = vadd.f32 %v952_v10, %v951_v39  ;;  %v1010_v44 = vsel %vm385_vm0, %v953_v57, 0.0  ;;  %v681_v6 = vmul.f32 1.442695, %v2347_v20  ;;  %v2431_v9 = vpop.permute.xlu1 %849  ;;  %v2916_v10 = vld [vmem:[#allocation17_spill] sm:$0xff]  ;;  %v2917_v57 = vld [vmem:[#allocation18_spill] sm:$0xff] }
  0xfc   : > { %v683_v58 = vmul.f32 1.442695, %v2351_v11  ;;  %vm911_vm11 = vcmp.eq.s32.totalorder %v2147_v37, %v843_v7  ;;  %1519 = vpow2.f32 %v2284_v22  ;;  %v954_v47 = vsel %vm906_vm8, %v2136_v53, 0.0 }
  0xfd   : > { %1007 = vadd.xlane.f32.xlu1 %v1006_v13  ;;  %v1011_v25 = vadd.f32 %v1010_v44, %v1009_v43  ;;  %v955_v46 = vsel %vm907_vm9, %v2139_v29, 0.0  ;;  %v956_v39 = vsel %vm908_vm10, %v2142_v30, 0.0  ;;  %v957_v12 = vsel %vm909_vm6, %v2916_v10, 0.0  ;;  %v2447_v13 = vpop.eup %1505  ;;  %v2455_v44 = vpop.permute.xlu0 %864 }
  0xfe   : > { %v1014_v32 = vadd.f32 %v955_v46, %v954_v47  ;;  %v958_v22 = vsel %vm910_vm7, %v2917_v57, 0.0  ;;  %1521 = vpow2.f32 %v2305_v41  ;;  %v1015_v53 = vsel %vm385_vm0, %v956_v39, 0.0  ;;  %v2919_v41 = vld [vmem:[#allocation8_spill] sm:$0xff]  ;;  %v2920_v57 = vld [vmem:[#allocation9_spill] sm:$0xff] }
  0xff   : > { %1012 = vadd.xlane.f32.xlu0 %v1011_v25  ;;  %v959_v29 = vsel %vm911_vm11, %v2918_v42, 0.0  ;;  %v1019_v43 = vadd.f32 %v958_v22, %v957_v12  ;;  %v2452_v30 = vpop.eup %1507  ;;  %1523 = vpow2.f32 %v2308_v4  ;;  %v690_v46 = vadd.f32 %v2259_v24, %v2252_v51  ;;  %v2476_v51 = vpop.permute.xlu1 %860  ;;  %v2921_v22 = vld [vmem:[#allocation10_spill] sm:$0xff] }
 0x100   : > { %v1016_v47 = vadd.f32 %v1015_v53, %v1014_v32  ;;  %v1020_v7 = vsel %vm385_vm0, %v959_v29, 0.0  ;;  %v2460_v10 = vpop.eup %1509  ;;  %1525 = vpow2.f32 %v2356_v21  ;;  %v2465_v25 = vsub.f32 %v2919_v41, %v2211_v38 }
 0x101   : > { %v1021_v39 = vadd.f32 %v1020_v7, %v1019_v43  ;;  %v691_v4 = vsel %vm385_vm0, %v2265_v40, 0.0  ;;  %v2469_v12 = vpop.eup %1511  ;;  %v663_v32 = vmul.f32 1.442695, %v2273_v31  ;;  %1527 = vpow2.f32 %v681_v6  ;;  %v2493_v43 = vpop.permute.xlu0 %875 }
 0x102   : > { %v2474_v24 = vsub.f32 %v2920_v57, %v2211_v38  ;;  %1017 = vadd.xlane.f32.xlu1 %v1016_v47  ;;  %v665_v21 = vmul.f32 1.442695, %v2288_v26  ;;  %1529 = vpow2.f32 %v683_v58  ;;  %v2481_v53 = vsub.f32 %v2921_v22, %v2211_v38  ;;  %v2923_v22 = vld [vmem:[#allocation33_spill] sm:$0xff] }
 0x103   : > { %1022 = vadd.xlane.f32.xlu0 %v1021_v39  ;;  %v2483_v40 = vpop.eup %1513  ;;  %1531 = vpow2.f32 %v2242_v48  ;;  %v692_v6 = vadd.f32 %v691_v4, %v690_v46  ;;  %v710_v42 = vadd.f32 %v2281_v55, %v2276_v18  ;;  %v673_v29 = vmul.f32 1.442695, %v2465_v25 }
 0x104   : > { %1533 = vpow2.f32 %v2319_v36  ;;  %v711_v58 = vsel %vm385_vm0, %v2291_v3, 0.0  ;;  %v675_v38 = vmul.f32 1.442695, %v2474_v24  ;;  %v677_v48 = vmul.f32 1.442695, %v2481_v53  ;;  %v2499_v36 = vpop.permute.xlu1 %871 }
 0x105   : > { %1535 = vpow2.f32 %v663_v32  ;;  %v685_v18 = vadd.f32 %v2206_v35, %v2193_v50  ;;  %v712_v7 = vadd.f32 %v711_v58, %v710_v42  ;;  %v686_v3 = vsel %vm385_vm0, %v2213_v62, 0.0  ;;  %v2922_v50 = vld [vmem:[#allocation20_spill] sm:$0xff] }
 0x106   : > { %693 = vadd.xlane.f32.xlu1 %v692_v6  ;;  %v1516_v47 = vpop.eup %1515  ;;  %1537 = vpow2.f32 %v665_v21  ;;  %v720_v46 = vadd.f32 %v2338_v1, %v2328_v19  ;;  %v721_v39 = vsel %vm385_vm0, %v2342_v15, 0.0  ;;  %v695_v35 = vadd.f32 %v2171_v28, %v2922_v50  ;;  %v2525_v28 = vpop.permute.xlu0 %886 }
 0x107   : > { %v365_v55 = vsel %vm2876_vm1, %v1516_v47, 0.0  ;;  %v2505_v41 = vpop.eup %1517  ;;  %1539 = vpow2.f32 %v673_v29  ;;  %vm915_vm12 = vcmp.eq.s32.totalorder %v2074_v56, %v2410_v0  ;;  %vm916_vm13 = vcmp.eq.s32.totalorder %v2105_v5, %v2410_v0 }
 0x108   : > { %366 = vadd.xlane.f32.xlu0 %v365_v55  ;;  %1541 = vpow2.f32 %v675_v38  ;;  %vm917_vm14 = vcmp.eq.s32.totalorder %v2147_v37, %v2410_v0  ;;  %vm912_vm15 = vcmp.eq.s32.totalorder %v2074_v56, %v2431_v9  ;;  %v687_v62 = vadd.f32 %v686_v3, %v685_v18 }
 0x109   : > { %v1520_v4 = vpop.eup %1519  ;;  %1543 = vpow2.f32 %v677_v48  ;;  %v696_v15 = vsel %vm385_vm0, %v2182_v34, 0.0  ;;  %vm913_vm2 = vcmp.eq.s32.totalorder %v2105_v5, %v2431_v9  ;;  %vm914_vm3 = vcmp.eq.s32.totalorder %v2147_v37, %v2431_v9 }
 0x10a   : > { %713 = vadd.xlane.f32.xlu1 %v712_v7  ;;  %v722_v1 = vadd.f32 %v721_v39, %v720_v46  ;;  %v730_v32 = vadd.f32 %v2392_v45, %v2385_v27  ;;  %vm921_vm4 = vcmp.eq.s32.totalorder %v2074_v56, %v2455_v44  ;;  %vm922_vm5 = vcmp.eq.s32.totalorder %v2105_v5, %v2455_v44  ;;  %v883_v27 = vpop.permute.xlu1 %882 }
 0x10b   : > { %v1522_v19 = vpop.eup %1521  ;;  %v731_v34 = vsel %vm385_vm0, %v2400_v23, 0.0  ;;  %v697_v45 = vadd.f32 %v696_v15, %v695_v35  ;;  %v700_v6 = vadd.f32 %v2923_v22, %v2222_v60  ;;  %v740_v42 = vadd.f32 %v2460_v10, %v2452_v30  ;;  %v2924_v23 = vld [vmem:[#allocation34_spill] sm:$0xff] }
 0x10c   : > { %v1524_v57 = vpop.eup %1523  ;;  %688 = vadd.xlane.f32.xlu0 %v687_v62  ;;  %v705_v29 = vadd.f32 %v2302_v61, %v2295_v54  ;;  %v701_v38 = vsel %vm385_vm0, %v2924_v23, 0.0  ;;  %v741_v47 = vsel %vm385_vm0, %v2469_v12, 0.0  ;;  %v706_v60 = vsel %vm385_vm0, %v2315_v17, 0.0 }
 0x10d   : > { %v1526_v21 = vpop.eup %1525  ;;  %v750_v30 = vadd.f32 %v1522_v19, %v1520_v4  ;;  %v732_v54 = vadd.f32 %v731_v34, %v730_v32  ;;  %v751_v61 = vsel %vm385_vm0, %v1524_v57, 0.0  ;;  %v715_v48 = vadd.f32 %v2369_v8, %v2359_v2  ;;  %v2927_v57 = vld [vmem:[#allocation21_spill] sm:$0xff]  ;;  %v2928_v34 = vld [vmem:[#allocation22_spill] sm:$0xff] }
 0x10e   : > { %723 = vadd.xlane.f32.xlu1 %v722_v1  ;;  %v1528_v58 = vpop.eup %1527  ;;  %vm930_vm1 = vcmp.eq.s32.totalorder %v2074_v56, %v883_v27  ;;  %vm931_vm10 = vcmp.eq.s32.totalorder %v2105_v5, %v883_v27  ;;  %vm932_vm9 = vcmp.eq.s32.totalorder %v2147_v37, %v883_v27  ;;  %v716_v17 = vsel %vm385_vm0, %v2376_v14, 0.0  ;;  %v2929_v27 = vld [vmem:[#allocation23_spill] sm:$0xff] }
 0x10f   : > { %v1530_v10 = vpop.eup %1529  ;;  %vm918_vm11 = vcmp.eq.s32.totalorder %v2074_v56, %v2476_v51  ;;  %vm919_vm8 = vcmp.eq.s32.totalorder %v2105_v5, %v2476_v51  ;;  %vm935_vm7 = vcmp.eq.s32.totalorder %v2147_v37, %v2525_v28  ;;  %v702_v2 = vadd.f32 %v701_v38, %v700_v6  ;;  %v2930_v6 = vld [vmem:[#allocation26_spill] sm:$0xff] }
 0x110   : > { %v2562_v18 = vpop.eup %1531  ;;  %698 = vadd.xlane.f32.xlu0 %v697_v45  ;;  %v742_v8 = vadd.f32 %v741_v47, %v740_v42  ;;  %v707_v55 = vadd.f32 %v706_v60, %v705_v29  ;;  %vm920_vm6 = vcmp.eq.s32.totalorder %v2147_v37, %v2476_v51  ;;  %v752_v14 = vadd.f32 %v751_v61, %v750_v30  ;;  %v2931_v47 = vld [vmem:[#allocation27_spill] sm:$0xff]  ;;  %v2932_v30 = vld [vmem:[#allocation28_spill] sm:$0xff] }
 0x111   : > { %v2569_v12 = vpop.eup %1533  ;;  %v760_v3 = vadd.f32 %v1528_v58, %v1526_v21  ;;  %v761_v46 = vsel %vm385_vm0, %v1530_v10, 0.0  ;;  %v725_v39 = vadd.f32 %v2425_v59, %v2421_v16  ;;  %v717_v50 = vadd.f32 %v716_v17, %v715_v48  ;;  %v2925_v16 = vld [vmem:[#allocation24_spill] sm:$0xff]  ;;  %v2933_v10 = vld [vmem:[#allocation29_spill] sm:$0xff] }
 0x112   : > { %733 = vadd.xlane.f32.xlu1 %v732_v54  ;;  %v2577_v7 = vpop.eup %1535  ;;  %v978_v35 = vsel %vm930_vm1, %v2465_v25, 0.0  ;;  %v979_v62 = vsel %vm931_vm10, %v2474_v24, 0.0  ;;  %v980_v15 = vsel %vm932_vm9, %v2481_v53, 0.0  ;;  %v726_v19 = vsel %vm385_vm0, %v2447_v13, 0.0  ;;  %v2926_v24 = vld [vmem:[#allocation25_spill] sm:$0xff] }
 0x113   : > { %v2584_v4 = vpop.eup %1537  ;;  %v960_v59 = vsel %vm912_vm15, %v2925_v16, 0.0  ;;  %v1054_v1 = vadd.f32 %v979_v62, %v978_v35  ;;  %v1055_v25 = vsel %vm385_vm0, %v980_v15, 0.0  ;;  %v961_v53 = vsel %vm913_vm2, %v2926_v24, 0.0  ;;  %v2941_v24 = vld [vmem:[#allocation30_spill] sm:$0xff] }
 0x114   : > { %703 = vadd.xlane.f32.xlu0 %v702_v2  ;;  %v2602_v32 = vpop.eup %1539  ;;  %v963_v13 = vsel %vm915_vm12, %v2927_v57, 0.0  ;;  %v964_v21 = vsel %vm916_vm13, %v2928_v34, 0.0  ;;  %v965_v45 = vsel %vm917_vm14, %v2929_v27, 0.0  ;;  %v962_v42 = vsel %vm914_vm3, %v2930_v6, 0.0  ;;  %v2942_v57 = vld [vmem:[#allocation31_spill] sm:$0xff] }
 0x115   : > { %v1542_v22 = vpop.eup %1541  ;;  %v2624_v29 = vadd.f32 %v1055_v25, %v1054_v1  ;;  %v1029_v58 = vadd.f32 %v964_v21, %v963_v13  ;;  %v1030_v23 = vsel %vm385_vm0, %v965_v45, 0.0  ;;  %v969_v60 = vsel %vm921_vm4, %v2931_v47, 0.0  ;;  %v2944_v21 = vld [vmem:[#allocation36_spill] sm:$0xff] }
 0x116   : > { %743 = vadd.xlane.f32.xlu1 %v742_v8  ;;  %v1544_v38 = vpop.eup %1543  ;;  %v970_v0 = vsel %vm922_vm5, %v2932_v30, 0.0  ;;  %vm2934_vm1 = vcmp.eq.s32.totalorder %v2147_v37, %v2455_v44  ;;  %vm2935_vm12 = vcmp.eq.s32.totalorder %v2074_v56, %v2493_v43  ;;  %vm2936_vm13 = vcmp.eq.s32.totalorder %v2105_v5, %v2493_v43  ;;  %v2937_v8 = vld [vmem:[#allocation35_spill] sm:$0xff] }
 0x117   : > { %v971_v9 = vsel %vm2934_vm1, %v2933_v10, 0.0  ;;  %v975_v54 = vsel %vm2935_vm12, %v2247_v49, 0.0  ;;  %v1031_v61 = vadd.f32 %v1030_v23, %v1029_v58  ;;  %v1039_v48 = vadd.f32 %v970_v0, %v969_v60 }
 0x118   : > { %708 = vadd.xlane.f32.xlu0 %v707_v55  ;;  %v1040_v17 = vsel %vm385_vm0, %v971_v9, 0.0  ;;  %v976_v2 = vsel %vm2936_vm13, %v2255_v52, 0.0  ;;  %vm2938_vm14 = vcmp.eq.s32.totalorder %v2147_v37, %v2493_v43  ;;  %vm2939_vm15 = vcmp.eq.s32.totalorder %v2074_v56, %v2525_v28 }
 0x119   : > { %v977_v44 = vsel %vm2938_vm14, %v2937_v8, 0.0  ;;  %v1049_v35 = vadd.f32 %v976_v2, %v975_v54  ;;  %v981_v49 = vsel %vm2939_vm15, %v2323_v63, 0.0  ;;  %vm2940_vm2 = vcmp.eq.s32.totalorder %v2105_v5, %v2525_v28 }
 0x11a   : > { %753 = vadd.xlane.f32.xlu1 %v752_v14  ;;  %v982_v55 = vsel %vm2940_vm2, %v2347_v20, 0.0  ;;  %v1041_v62 = vadd.f32 %v1040_v17, %v1039_v48  ;;  %v1050_v52 = vsel %vm385_vm0, %v977_v44, 0.0  ;;  %v983_v43 = vsel %vm935_vm7, %v2351_v11, 0.0 }
 0x11b   : > { %v1059_v14 = vadd.f32 %v982_v55, %v981_v49  ;;  %v762_v15 = vadd.f32 %v761_v46, %v760_v3  ;;  %v1024_v16 = vadd.f32 %v961_v53, %v960_v59  ;;  %v1051_v1 = vadd.f32 %v1050_v52, %v1049_v35  ;;  %v2943_v3 = vld [vmem:[#allocation32_spill] sm:$0xff] }
 0x11c   : > { %v1060_v25 = vsel %vm385_vm0, %v983_v43, 0.0  ;;  %718 = vadd.xlane.f32.xlu0 %v717_v50  ;;  %v1025_v63 = vsel %vm385_vm0, %v962_v42, 0.0  ;;  %v966_v20 = vsel %vm918_vm11, %v2941_v24, 0.0  ;;  %v967_v28 = vsel %vm919_vm8, %v2942_v57, 0.0 }
 0x11d   : > { %v1061_v11 = vadd.f32 %v1060_v25, %v1059_v14  ;;  %vm924_vm3 = vcmp.eq.s32.totalorder %v2074_v56, %v2499_v36  ;;  %vm925_vm4 = vcmp.eq.s32.totalorder %v2105_v5, %v2499_v36  ;;  %v968_v46 = vsel %vm920_vm6, %v2943_v3, 0.0 }
 0x11e   : > { %763 = vadd.xlane.f32.xlu1 %v762_v15  ;;  %vm926_vm5 = vcmp.eq.s32.totalorder %v2147_v37, %v2499_v36  ;;  %v727_v50 = vadd.f32 %v726_v19, %v725_v39  ;;  %v735_v59 = vadd.f32 %v2505_v41, %v2483_v40  ;;  %v1026_v53 = vadd.f32 %v1025_v63, %v1024_v16 }
 0x11f   : > { %v736_v13 = vsel %vm385_vm0, %v2562_v18, 0.0  ;;  %v1034_v34 = vadd.f32 %v967_v28, %v966_v20  ;;  %v1035_v5 = vsel %vm385_vm0, %v968_v46, 0.0  ;;  %v972_v27 = vsel %vm924_vm3, %v2944_v21, 0.0 }
 0x120   : > { %728 = vadd.xlane.f32.xlu0 %v727_v50  ;;  %v973_v51 = vsel %vm925_vm4, %v2273_v31, 0.0  ;;  %v974_v45 = vsel %vm926_vm5, %v2288_v26, 0.0  ;;  %v737_v37 = vadd.f32 %v736_v13, %v735_v59  ;;  %v745_v36 = vadd.f32 %v2577_v7, %v2569_v12  ;;  %v375_v31 = vpop.permute.xlu1 %374 }
 0x121   : > { %v1036_v40 = vadd.f32 %v1035_v5, %v1034_v34  ;;  %v746_v41 = vsel %vm385_vm0, %v2584_v4, 0.0  ;;  %v1044_v18 = vadd.f32 %v973_v51, %v972_v27  ;;  %v1045_v39 = vsel %vm385_vm0, %v974_v45, 0.0 }
 0x122   : > { %1027 = vadd.xlane.f32.xlu1 %v1026_v53  ;;  %v747_v19 = vadd.f32 %v746_v41, %v745_v36  ;;  %v755_v6 = vadd.f32 %v1542_v22, %v2602_v32  ;;  %v756_v26 = vsel %vm385_vm0, %v1544_v38, 0.0  ;;  %vm376_vm6 = vcmp.eq.s32.totalorder %v2074_v56, %v375_v31  ;;  %v2712_v32 = vld [vmem:[%s347_s13] sm:$0xff]  ;;  %s2803_s13 = scalar_lea.hbm %s2846_s6, %s1382_s17 }
 0x123   : > { %v1046_v42 = vadd.f32 %v1045_v39, %v1044_v18  ;;  %v377_v7 = vsel %vm376_vm6, %v2326_v33, 0.0  ;;  %vm2945_vm7 = vcmask 48128   ;;  %v2714_v22 = vld [vmem:[%s356_s18] sm:$0xff]  ;;  %vm1188_vm8 = vcmask 130048   ;;  %s1611_s18 = sshll.u32 %s1677_s16, 4  ;;  %s1612_s18 = int_to_ptr.vmem [resolvable:$false] %s1611_s18 }
 0x124   : > { %738 = vadd.xlane.f32.xlu0 %v737_v37  ;;  %v757_v12 = vadd.f32 %v756_v26, %v755_v6  ;;  %v378_v4 = vsel %vm2945_vm7, %v377_v7, 0.0  ;;  %v398_v33 = vsel %vm385_vm0, %v2712_v32, 0.0  ;;  %v1102_v46 = vadd.s32 4294967288, %v2074_v56  ;;  %s1613_s15 = scalar_lea.vmem %s1612_s18, 256  ;;  %p1614_p7 = scmp.lt.s32.totalorder %s1239_s26, %s1612_s18 }
 0x125   : > { %vm1107_vm9 = vcmask 130112   ;;  %vm1172_vm10 = vcmask 1041409   ;;  %vm383_vm11 = vcmp.gt.f32.partialorder %v2712_v32, 0.0  ;;  %vm1174_vm1 = vcmask 1042434   ;;  %p1615_p8 = scmp.lt.s32.totalorder %s1613_s15, %s1607_s25 }
 0x126   : > { %1037 = vadd.xlane.f32.xlu1 %v1036_v40  ;;  %v2946_v40 = vld [vmem:[#allocation11_spill] sm:$0xff]  ;;  %vm1178_vm12 = vcmask 1044484   ;;  %vm1180_vm13 = vcmask 1045509   ;;  %vm1182_vm14 = vcmask 1046534   ;;  %vm1184_vm15 = vcmask 1047559  }
 0x127   : > { %v2746_v41 = vsub.s32 %v1102_v46, %v2946_v40  ;;  %v2750_v18 = vsub.s32 %v2074_v56, %v2946_v40  ;;  %vm1081_vm2 = vcmp.gt.f32.partialorder %v2714_v22, 0.0  ;;  %vm1218_vm3 = vcmp.eq.s32.totalorder %v2946_v40, 3  ;;  %p1616_p10 = por %p1615_p8, %p1614_p7 }
 0x128   : > { %748 = vadd.xlane.f32.xlu0 %v747_v19  ;;  %vm1217_vm4 = vcmp.eq.s32.totalorder %v2946_v40, 2  ;;  %vm1216_vm5 = vcmp.eq.s32.totalorder %v2946_v40, 1  ;;  %vm1215_vm6 = vcmp.eq.s32.totalorder %v2946_v40, 0 }
 0x129   : > { %p1617_p0 = pnand %p1616_p10, %p1610_p5 }
 0x12a   : > { %1047 = vadd.xlane.f32.xlu1 %v1046_v42 }
 0x12c   : > { %758 = vadd.xlane.f32.xlu0 %v757_v12 }
 0x12e   : > { %1057 = vadd.xlane.f32.xlu1 %v2624_v29  ;;  %v1201_v29 = vsel %vm1188_vm8, %v2714_v22, 0.0 }
 0x130   : > { %1032 = vadd.xlane.f32.xlu0 %v1031_v61 }
 0x132   : > { %379 = vadd.xlane.f32.xlu1 %v378_v4 }
 0x134   : > { %1042 = vadd.xlane.f32.xlu0 %v1041_v62 }
 0x136   : > { %399 = vadd.xlane.f32.xlu1 %v398_v33 }
 0x138   : > { %1052 = vadd.xlane.f32.xlu0 %v1051_v1 }
 0x13a   : > { %1202 = vadd.xlane.f32.xlu1 %v1201_v29 }
 0x13c   : > { %1062 = vadd.xlane.f32.xlu0 %v1061_v11 }
 0x177   : > { %v2720_v58 = vpop.xlane.xlu1 %987 }
 0x17c   : > { %v2724_v38 = vpop.xlane.xlu1 %997 }
 0x17e   : > { %v2722_v23 = vpop.xlane.xlu0 %992 }
 0x182   : > { %v2726_v47 = vpop.xlane.xlu0 %1002 }
 0x186   : > { %v2728_v60 = vpop.xlane.xlu1 %1007 }
 0x188   : > { %v2730_v30 = vpop.xlane.xlu0 %1012 }
 0x18b   : > { %v2732_v0 = vpop.xlane.xlu1 %1017 }
 0x18c   : > { %v2734_v10 = vpop.xlane.xlu0 %1022 }
 0x18f   : > { %v694_v9 = vpop.xlane.xlu1 %693 }
 0x190   : > { %1545 = vlog2.f32 %v694_v9 }
 0x191   : > { %v367_v54 = vpop.xlane.xlu0 %366 }
 0x193   : > { %v714_v61 = vpop.xlane.xlu1 %713 }
 0x194   : > { %1547 = vlog2.f32 %v714_v61 }
 0x195   : > { %v689_v48 = vpop.xlane.xlu0 %688 }
 0x196   : > { %1549 = vlog2.f32 %v689_v48 }
 0x197   : > { %v724_v17 = vpop.xlane.xlu1 %723 }
 0x198   : > { %1551 = vlog2.f32 %v724_v17 }
 0x199   : > { %v699_v2 = vpop.xlane.xlu0 %698 }
 0x19b   : > { %v734_v8 = vpop.xlane.xlu1 %733 }
 0x19d   : > { %v704_v44 = vpop.xlane.xlu0 %703  ;;  %v1546_v16 = vpop.eup %1545 }
 0x19e   : > { %1553 = vlog2.f32 %v704_v44  ;;  %v768_v34 = vmul.f32 0.6931472, %v1546_v16 }
 0x19f   : > { %v744_v35 = vpop.xlane.xlu1 %743  ;;  %1555 = vlog2.f32 %v699_v2 }
 0x1a0   : > { %v1066_v7 = vsub.f32 %v768_v34, %v2722_v23 }
 0x1a1   : > { %v709_v49 = vpop.xlane.xlu0 %708  ;;  %v1548_v25 = vpop.eup %1547 }
 0x1a2   : > { %1557 = vlog2.f32 %v709_v49  ;;  %v776_v5 = vmul.f32 0.6931472, %v1548_v25 }
 0x1a3   : > { %v754_v55 = vpop.xlane.xlu1 %753  ;;  %v1550_v63 = vpop.eup %1549 }
 0x1a4   : > { %v766_v21 = vmul.f32 0.6931472, %v1550_v63  ;;  %v1070_v4 = vsub.f32 %v776_v5, %v2730_v30 }
 0x1a5   : > { %v719_v62 = vpop.xlane.xlu0 %718  ;;  %v1552_v24 = vpop.eup %1551 }
 0x1a6   : > { %1559 = vlog2.f32 %v719_v62  ;;  %v780_v39 = vmul.f32 0.6931472, %v1552_v24  ;;  %v1065_v33 = vsub.f32 %v766_v21, %v2720_v58 }
 0x1a7   : > { %v764_v52 = vpop.xlane.xlu1 %763  ;;  %1561 = vlog2.f32 %v367_v54 }
 0x1a8   : > { %v1072_v48 = vsub.f32 %v780_v39, %v2734_v10  ;;  %v1106_v10 = vrot.slane %v1066_v7, %v2746_v41 }
 0x1a9   : > { %v729_v43 = vpop.xlane.xlu0 %728 }
 0x1aa   : > { %1563 = vlog2.f32 %v729_v43  ;;  %v1134_v25 = vrot.slane %v1072_v48, %v2746_v41 }
 0x1ab   : > { %v2736_v14 = vpop.xlane.xlu1 %1027  ;;  %1565 = vlog2.f32 %v734_v8  ;;  %v1554_v57 = vpop.eup %1553 }
 0x1ac   : > { %1567 = vlog2.f32 %v744_v35  ;;  %v1556_v11 = vpop.eup %1555  ;;  %v772_v59 = vmul.f32 0.6931472, %v1554_v57 }
 0x1ad   : > { %v739_v15 = vpop.xlane.xlu0 %738  ;;  %v770_v45 = vmul.f32 0.6931472, %v1556_v11 }
 0x1ae   : > { %1569 = vlog2.f32 %v739_v15  ;;  %v1068_v31 = vsub.f32 %v772_v59, %v2726_v47 }
 0x1af   : > { %v2738_v1 = vpop.xlane.xlu1 %1037  ;;  %1571 = vlog2.f32 %v754_v55  ;;  %v1558_v3 = vpop.eup %1557  ;;  %v1067_v9 = vsub.f32 %v770_v45, %v2724_v38 }
 0x1b0   : > { %v774_v37 = vmul.f32 0.6931472, %v1558_v3  ;;  %v1116_v58 = vrot.slane %v1068_v31, %v2746_v41 }
 0x1b1   : > { %v749_v20 = vpop.xlane.xlu0 %748  ;;  %v1112_v62 = vrot.slane %v1067_v9, %v2750_v18 }
 0x1b2   : > { %1573 = vlog2.f32 %v749_v20  ;;  %v1069_v54 = vsub.f32 %v774_v37, %v2728_v60 }
 0x1b3   : > { %v2740_v28 = vpop.xlane.xlu1 %1047  ;;  %1575 = vlog2.f32 %v764_v52  ;;  %v1560_v50 = vpop.eup %1559  ;;  %v1117_v63 = vsel %vm1107_vm9, %v1116_v58, %v1112_v62 }
 0x1b4   : > { %v1562_v13 = vpop.eup %1561  ;;  %v778_v19 = vmul.f32 0.6931472, %v1560_v50  ;;  %v1121_v52 = vrot.slane %v1069_v54, %v2750_v18 }
 0x1b5   : > { %v759_v53 = vpop.xlane.xlu0 %758  ;;  %v369_v12 = vmul.f32 0.6931472, %v1562_v13 }
 0x1b6   : > { %1577 = vlog2.f32 %v759_v53  ;;  %v1071_v17 = vsub.f32 %v778_v19, %v2732_v0  ;;  %v1101_v0 = vrot.slane %v1065_v33, %v2750_v18 }
 0x1b7   : > { %v2743_v27 = vpop.xlane.xlu1 %1057  ;;  %v1564_v51 = vpop.eup %1563 }
 0x1b8   : > { %v1566_v36 = vpop.eup %1565  ;;  %v782_v42 = vmul.f32 0.6931472, %v1564_v51  ;;  %v1130_v15 = vrot.slane %v1071_v17, %v2750_v18  ;;  %v1108_v53 = vsel %vm1107_vm9, %v1106_v10, %v1101_v0 }
 0x1b9   : > { %v1568_v6 = vpop.eup %1567  ;;  %v1033_v26 = vpop.xlane.xlu0 %1032  ;;  %v784_v61 = vmul.f32 0.6931472, %v1566_v36  ;;  %v1173_v37 = vsel %vm1172_vm10, %v1117_v63, %v1108_v53 }
 0x1ba   : > { %v788_v2 = vmul.f32 0.6931472, %v1568_v6  ;;  %v1073_v8 = vsub.f32 %v782_v42, %v2736_v14  ;;  %v1125_v14 = vrot.slane %v1070_v4, %v2746_v41  ;;  %v1135_v5 = vsel %vm1107_vm9, %v1134_v25, %v1130_v15 }
 0x1bb   : > { %v380_v29 = vpop.xlane.xlu1 %379  ;;  %v1570_v56 = vpop.eup %1569  ;;  %v1074_v44 = vsub.f32 %v784_v61, %v1033_v26 }
 0x1bc   : > { %v382_v47 = vsub.f32 %v369_v12, %v380_v29  ;;  %v786_v23 = vmul.f32 0.6931472, %v1570_v56  ;;  %v1572_v30 = vpop.eup %1571  ;;  %v1139_v24 = vrot.slane %v1073_v8, %v2750_v18  ;;  %v1126_v13 = vsel %vm1107_vm9, %v1125_v14, %v1121_v52 }
 0x1bd   : > { %v1043_v32 = vpop.xlane.xlu0 %1042  ;;  %v1143_v20 = vrot.slane %v1074_v44, %v2746_v41  ;;  %v1175_v31 = vsel %vm1174_vm1, %v1126_v13, %v1173_v37 }
 0x1be   : > { %v384_v35 = vsel %vm383_vm11, %v382_v47, 0.0  ;;  %v1075_v38 = vsub.f32 %v786_v23, %v2738_v1  ;;  %v1076_v49 = vsub.f32 %v788_v2, %v1043_v32  ;;  %v792_v1 = vmul.f32 0.6931472, %v1572_v30 }
 0x1bf   : > { %v386_v60 = vsel %vm385_vm0, %v384_v35, 0.0  ;;  %v1574_v55 = vpop.eup %1573  ;;  %vm1176_vm0 = vcmask 1043459   ;;  %v400_v61 = vpop.xlane.xlu1 %399 }
 0x1c0   : > { %387 = vadd.xlane.f32.xlu0 %v386_v60  ;;  %v1576_v43 = vpop.eup %1575  ;;  %v790_v16 = vmul.f32 0.6931472, %v1574_v55  ;;  %v1148_v11 = vrot.slane %v1075_v38, %v2750_v18  ;;  %v1152_v46 = vrot.slane %v1076_v49, %v2746_v41  ;;  %v1177_v26 = vsel %vm1176_vm0, %v1135_v5, %v1175_v31 }
 0x1c1   : > { %v1053_v57 = vpop.xlane.xlu0 %1052  ;;  %v796_v34 = vmul.f32 0.6931472, %v1576_v43  ;;  %v401_v47 = vrot.slane %v400_v61, 4 }
 0x1c2   : > { %v1077_v3 = vsub.f32 %v790_v16, %v2740_v28  ;;  %v1078_v50 = vsub.f32 %v792_v1, %v1053_v57  ;;  %v1144_v28 = vsel %vm1107_vm9, %v1143_v20, %v1139_v24  ;;  %v1153_v19 = vsel %vm1107_vm9, %v1152_v46, %v1148_v11 }
 0x1c3   : > { %v1578_v59 = vpop.eup %1577  ;;  %v1179_v4 = vsel %vm1178_vm12, %v1144_v28, %v1177_v26  ;;  %v402_v48 = vadd.f32 %v401_v47, %v400_v61  ;;  %v1203_v30 = vpop.xlane.xlu1 %1202 }
 0x1c4   : > { %v1157_v21 = vrot.slane %v1077_v3, %v2750_v18  ;;  %v794_v51 = vmul.f32 0.6931472, %v1578_v59  ;;  %v1161_v45 = vrot.slane %v1078_v50, %v2746_v41  ;;  %v1181_v33 = vsel %vm1180_vm13, %v1153_v19, %v1179_v4 }
 0x1c5   : > { %v1063_v36 = vpop.xlane.xlu0 %1062  ;;  %v403_v17 = vrot.slane %v402_v48, 2  ;;  %v1204_v8 = vrot.slane %v1203_v30, 4 }
 0x1c6   : > { %v1079_v39 = vsub.f32 %v794_v51, %v2743_v27  ;;  %v1080_v6 = vsub.f32 %v796_v34, %v1063_v36  ;;  %v1162_v42 = vsel %vm1107_vm9, %v1161_v45, %v1157_v21 }
 0x1c7   : > { %v1183_v29 = vsel %vm1182_vm14, %v1162_v42, %v1181_v33  ;;  %v1205_v38 = vadd.f32 %v1204_v8, %v1203_v30 }
 0x1c8   : > { %v1166_v12 = vrot.slane %v1079_v39, %v2750_v18  ;;  %v1170_v7 = vrot.slane %v1080_v6, %v2746_v41  ;;  %v404_v41 = vadd.f32 %v403_v17, %v402_v48 }
 0x1c9   : > { %v1206_v60 = vrot.slane %v1205_v38, 2 }
 0x1ca   : > { %v1171_v27 = vsel %vm1107_vm9, %v1170_v7, %v1166_v12  ;;  %v405_v22 = vrot.slane %v404_v41, 1 }
 0x1cb   : > { %v1185_v56 = vsel %vm1184_vm15, %v1171_v27, %v1183_v29  ;;  %v1207_v62 = vadd.f32 %v1206_v60, %v1205_v38 }
 0x1cc   : > { %v1187_v9 = vsel %vm1081_vm2, %v1185_v56, 0.0  ;;  %v406_v35 = vadd.f32 %v405_v22, %v404_v41 }
 0x1cd   : > { %v1189_v54 = vsel %vm1188_vm8, %v1187_v9, 0.0  ;;  %v1208_v14 = vrot.slane %v1207_v62, 1 }
 0x1ce   : > { %1190 = vadd.xlane.f32.xlu0 %v1189_v54 }
 0x1cf   : > { %v1209_v1 = vadd.f32 %v1208_v14, %v1207_v62 }
 0x249   : > { %v388_v18 = vpop.xlane.xlu0 %387 }
 0x24a   : > { %v389_v23 = vrot.slane %v388_v18, 4 }
 0x24c   : > { %v390_v2 = vadd.f32 %v389_v23, %v388_v18 }
 0x24e   : > { %v391_v58 = vrot.slane %v390_v2, 2 }
 0x250   : > { %v392_v44 = vadd.f32 %v391_v58, %v390_v2 }
 0x252   : > { %v393_v32 = vrot.slane %v392_v44, 1 }
 0x254   : > { %v394_v49 = vadd.f32 %v393_v32, %v392_v44 }
 0x256   : > { %1388 = vpush %v394_v49 }
 0x257   : > { %1390 = vpush %v406_v35  ;;  %v1191_v55 = vpop.xlane.xlu0 %1190 }
 0x258   : > { %v1192_v10 = vrot.slane %v1191_v55, 4 }
 0x25a   : > { %v1193_v0 = vadd.f32 %v1192_v10, %v1191_v55 }
 0x25c   : > { %v1194_v52 = vrot.slane %v1193_v0, 2 }
 0x25e   : > { %v1195_v43 = vadd.f32 %v1194_v52, %v1193_v0 }
 0x260   : > { %v1196_v15 = vrot.slane %v1195_v43, 1 }
 0x262   : > { %v1197_v16 = vadd.f32 %v1196_v15, %v1195_v43 }
 0x264   : > { %1392 = vpush %v1197_v16 }
 0x265   : > { %1394 = vpush %v1209_v1 }
 0x287   : > { %s1389_s19 = spop %1388 }
 0x288   : > { %s1391_s10 = spop %1390  ;;  %v396_v11 = vstv %s1389_s19 }
 0x289   : > { %v408_v20 = vstv %s1391_s10 }
 0x295   : > { %s1393_s12 = spop %1392 }
 0x296   : > { %v1199_v25 = vstv %s1393_s12  ;;  %s1395_s14 = spop %1394 }
 0x297   : > { %v1211_v63 = vstv %s1395_s14 }
 0x298   : > { %v1219_v24 = vsel %vm1218_vm3, %v1211_v63, 0.0 }
 0x299   : > { %v1220_v57 = vsel %vm1217_vm4, %v1199_v25, %v1219_v24 }
 0x29a   : > { %v1221_v3 = vsel %vm1216_vm5, %v408_v20, %v1220_v57 }
 0x29b   : > { %v1222_v46 = vsel %vm1215_vm6, %v396_v11, %v1221_v3 }
 0x29c   : > { %1223 = vst [vmem:[%s335_s20] sm:$0xff] %v1222_v46 }
 0x29d   : > { %1620 = shalt.err (!%p1617_p0)
}
 0x29e   : > { %s1621_s19 = scalar_lea.hbm %s2803_s13, 128  ;;  %s1625_s12 = scalar_lea.hbm %s2846_s6, 256 }
 0x29f   : > { %p1622_p2 = scmp.ne.s32.totalorder %s2803_s13, %s1621_s19  ;;  %p1626_p3 = scmp.lt.s32.totalorder %s2803_s13, %s2846_s6 }
 0x2a0   : > { %p1627_p6 = scmp.lt.s32.totalorder %s1625_s12, %s1621_s19 }
 0x2a1   : > { %p1623_p9 = pnand %p1622_p2, %p2947_p13 }
 0x2a2   : > { %p1628_p11 = por %p1627_p6, %p1626_p3 }
 0x2a3   : > { %p1624_p1 = pneg %p1623_p9 }
 0x2a5   : > { %p1629_p12 = pnand %p1628_p11, %p1624_p1 }
 0x2a7   : > { %1632 = shalt.err (!%p1629_p12)
}
 0x2a8   : > { %1398 = dma.vmem_to_hbm [thread:$0]  (%p2947_p13), %s1239_s26, 128, %s2803_s13, %s1225_s7  }
 0x2a9 PF: > { %s1250_s20 = sand.u32 1, %s1659_s21   ;;  %p2948_p4 = scmp.ne.s32.totalorder %s2879_s9, 0 }
 0x2aa   : > { %p2949_p5 = scmp.ge.s32.totalorder %s1671_s24, 2  ;;  %s1251_s29 = scalar_lea.sflag [#allocation4], %s1250_s20 }
 0x2ac   : > { %p1405_p7 = pnand %p2949_p5, %p2948_p4 }
 0x2ae   : > { %p1406_p8 = pneg %p1405_p7 }
 0x2b0   : > { %1654 = dma.done.wait (%p1406_p8), %s1251_s29, 128  }
 0x2b1   : > { %1656 = vsyncadd (%p1406_p8), %s1251_s29, 4294967168  ;;  %p19_p10 = scmp.ge.s32.totalorder %s1738_s27, 4   ;;  %s2950_s21 = smov %s1663_s22 }
 0x2b2   : > { %s2951_s22 = smov %s1667_s23  ;;  %s2952_s23 = smov %s1750_s30 }
 0x2b3   : > { %s2953_s24 = smov %s1738_s27  ;;  %21 = sbr.rel (!%p19_p10) target bundleno = 5 (0x5), region = 105 }
 0x2b8   :  { %1256 = vsyncpa [#allocation3], 1 }
 0x2b9   :  { %1258 = vsyncpa [#allocation3 + $0x1], 1 }
 0x2ba   :  { %1259 = vsyncpa [#allocation4], 1 }
 0x2bb   :  { %1261 = vsyncpa [#allocation4 + $0x1], 1 }

</bundles_post_ra>
